<compile_context>
chip_gen: v6e
topology: v6e:2x2x1
jax: 0.10.0
libtpu: 0.0.40
codegen_flags: <defaults>
</compile_context>

<pallas_src>
import jax
import jax.numpy as jnp
from jax.experimental import pallas as pl
from jax.experimental.pallas import tpu as pltpu

BN_EPS = 1e-5


def _conv_tile(xm_ref, xh_ref, w_ref):
    """ReLU + 3x3/stride-2 conv (as a 2x2 conv over the space-to-depth input) for one
    (TR output rows) x (all output cols) tile.  Returns f32 (TR, Wo, Cpad)."""
    TR = xm_ref.shape[1]
    Wp1 = xm_ref.shape[2]
    C4 = xm_ref.shape[3]
    Cp = w_ref.shape[2]
    Wo = Wp1 - 1

    # ReLU in f32 (v5e VPU has no bf16 elementwise), then bf16 operands for the MXU.
    xm = jnp.maximum(xm_ref[0].astype(jnp.float32), 0.0).astype(jnp.bfloat16)  # (TR, Wp1, C4)
    xh = jnp.maximum(xh_ref[0].astype(jnp.float32), 0.0).astype(jnp.bfloat16)  # (1,  Wp1, C4)

    rows_lo = xm                                                   # s2d rows r .. r+TR-1 (dh = 0)
    if TR == 1:
        rows_hi = xh                                               # s2d rows r+1 .. r+TR (dh = 1)
    else:
        rows_hi = jnp.concatenate([xm[1:], xh], axis=0)

    acc = jnp.zeros((TR, Wo, Cp), jnp.float32)
    # 4 taps of the equivalent 2x2 stride-1 conv: tap index t = 2*dh + dw
    for t, (src, dw) in enumerate(((rows_lo, 0), (rows_lo, 1), (rows_hi, 0), (rows_hi, 1))):
        p = src[:, dw:dw + Wo, :]                                  # (TR, Wo, C4) unit-stride slice
        wt = jnp.broadcast_to(w_ref[t], (TR, C4, Cp))              # (TR, C4, Cp)
        acc = acc + jnp.einsum('rwk,rkc->rwc', p, wt,
                               preferred_element_type=jnp.float32)
    return acc


def _stats_kernel(xm_ref, xh_ref, w_ref, s1_ref, s2_ref):
    """Accumulate per-image, per-channel sum and sum-of-squares of y = conv(relu(x))."""
    acc = _conv_tile(xm_ref, xh_ref, w_ref)                        # (TR, Wo, Cp) f32
    s1 = jnp.sum(jnp.sum(acc, axis=0), axis=0)[None, :]            # (1, Cp)
    s2 = jnp.sum(jnp.sum(acc * acc, axis=0), axis=0)[None, :]      # (1, Cp)

    @pl.when(pl.program_id(1) == 0)
    def _():
        s1_ref[...] = jnp.zeros_like(s1_ref)
        s2_ref[...] = jnp.zeros_like(s2_ref)

    s1_ref[0] = s1_ref[0] + s1
    s2_ref[0] = s2_ref[0] + s2


def _apply_kernel(xm_ref, xh_ref, w_ref, sc_ref, sh_ref, o_ref):
    """Recompute the conv tile and apply the folded BN scale/shift (single FMA)."""
    acc = _conv_tile(xm_ref, xh_ref, w_ref)                        # (TR, Wo, Cp) f32
    o_ref[0] = (acc * sc_ref[...] + sh_ref[...]).astype(o_ref.dtype)


def _pick_row_block(ho, wo, max_rows_x_cols=8192):
    """Largest divisor of `ho` whose f32 accumulator tile stays around <= 4 MiB."""
    best = 1
    for tr in range(1, ho + 1):
        if ho % tr == 0 and tr * wo <= max_rows_x_cols:
            best = tr
    return best


@jax.jit
def stem1_imagenet_forward(x_nchw, w_oihw, gamma, beta):
    """x_nchw: (N, Cin, H, W); w_oihw: (Cout, Cin, 3, 3); gamma/beta: (Cout,)."""
    N, Cin, H, W = x_nchw.shape
    Cout = w_oihw.shape[0]
    Ho = (H + 2 - 3) // 2 + 1
    Wo = (W + 2 - 3) // 2 + 1
    C4 = 4 * Cin
    Cp = ((Cout + 127) // 128) * 128          # lane-dense padded output channels

    # --- glue: zero-pad + stride-2 space-to-depth (pure permutation, no expansion) ---
    # x_s2d[n, i, j, (2*rp + cp)*Cin + c] == x_padded[n, c, 2*i + rp, 2*j + cp]
    pad_b = 2 * Ho + 1 - H
    pad_r = 2 * Wo + 1 - W
    xp = jnp.pad(x_nchw, ((0, 0), (0, 0), (1, pad_b), (1, pad_r)))
    xp = xp.reshape(N, Cin, Ho + 1, 2, Wo + 1, 2)
    x_s2d = jnp.transpose(xp, (0, 2, 4, 3, 5, 1)).reshape(N, Ho + 1, Wo + 1, C4)
    x_s2d = x_s2d.astype(jnp.bfloat16)

    # --- glue: OIHW weights -> 4 taps of the equivalent 2x2 conv, channel-padded ---
    # w2[t=(2*dh+dw), (2*rp+cp)*Cin + c, co] = w[co, c, kh=2*dh+rp, kw=2*dw+cp] (0 if kh/kw==3)
    w4 = jnp.pad(w_oihw.astype(jnp.float32),
                 ((0, Cp - Cout), (0, 0), (0, 1), (0, 1)))          # (Cp, Cin, 4, 4)
    w4 = w4.reshape(Cp, Cin, 2, 2, 2, 2)                            # (Cp, Cin, dh, rp, dw, cp)
    w2 = jnp.transpose(w4, (2, 4, 3, 5, 1, 0)).reshape(4, C4, Cp).astype(jnp.bfloat16)

    TR = _pick_row_block(Ho, Wo)
    HB = Ho // TR
    grid = (N, HB)

    x_main_spec = pl.BlockSpec((1, TR, Wo + 1, C4), lambda n, h: (n, h, 0, 0))
    # halo: the single s2d row just below the row block (block dim 1 => block idx == element idx)
    x_halo_spec = pl.BlockSpec((1, 1, Wo + 1, C4), lambda n, h: (n, (h + 1) * TR, 0, 0))
    w_spec = pl.BlockSpec((4, C4, Cp), lambda n, h: (0, 0, 0))

    # --- pass 1: per-image BN statistics (sum, sum of squares), f32 accumulators ---
    stat_spec = pl.BlockSpec((1, 1, Cp), lambda n, h: (n, 0, 0))
    s1, s2 = pl.pallas_call(
        _stats_kernel,
        out_shape=(jax.ShapeDtypeStruct((N, 1, Cp), jnp.float32),
                   jax.ShapeDtypeStruct((N, 1, Cp), jnp.float32)),
        grid=grid,
        in_specs=[x_main_spec, x_halo_spec, w_spec],
        out_specs=(stat_spec, stat_spec),
        compiler_params=pltpu.CompilerParams(
            dimension_semantics=("parallel", "arbitrary"),
            vmem_limit_bytes=32 * 1024 * 1024),
    )(x_s2d, x_s2d, w2)

    # --- fold BN into a per-channel scale/shift (tiny (Cp,) math in f32) ---
    m_total = jnp.float32(N * Ho * Wo)
    mean = jnp.sum(s1[:, 0, :], axis=0) / m_total
    var = jnp.maximum(jnp.sum(s2[:, 0, :], axis=0) / m_total - mean * mean, 0.0)
    g = jnp.pad(gamma.astype(jnp.float32), (0, Cp - Cout))
    b = jnp.pad(beta.astype(jnp.float32), (0, Cp - Cout))
    scale1 = g * jax.lax.rsqrt(var + BN_EPS)
    shift1 = b - mean * scale1
    scale = scale1.reshape(1, Cp)
    shift = shift1.reshape(1, Cp)

    # --- pass 2: recompute the cheap conv + fused scale/shift, lane-dense output ---
    sc_spec = pl.BlockSpec((1, Cp), lambda n, h: (0, 0))
    out_spec = pl.BlockSpec((1, TR, Wo, Cp), lambda n, h: (n, h, 0, 0))
    y = pl.pallas_call(
        _apply_kernel,
        out_shape=jax.ShapeDtypeStruct((N, Ho, Wo, Cp), jnp.float32),
        grid=grid,
        in_specs=[x_main_spec, x_halo_spec, w_spec, sc_spec, sc_spec],
        out_specs=out_spec,
        compiler_params=pltpu.CompilerParams(
            dimension_semantics=("parallel", "parallel"),
            vmem_limit_bytes=32 * 1024 * 1024),
    )(x_s2d, x_s2d, w2, scale, shift)

    # TODO(synk): the NCHW<->NHWC boundary transposes exist only to match the PyTorch
    # module interface; an NHWC consumer would take y[..., :Cout] directly.
    return jnp.transpose(y[..., :Cout], (0, 3, 1, 2))


def _reference(x_nchw, w_oihw, gamma, beta):
    """Pure-JAX reference mirroring the PyTorch forward (training-mode BN, f32)."""
    x = jnp.maximum(x_nchw.astype(jnp.float32), 0.0)
    y = jax.lax.conv_general_dilated(
        x, w_oihw.astype(jnp.float32), window_strides=(2, 2),
        padding=((1, 1), (1, 1)), dimension_numbers=('NCHW', 'OIHW', 'NCHW'))
    mean = jnp.mean(y, axis=(0, 2, 3), keepdims=True)
    var = jnp.mean(jnp.square(y - mean), axis=(0, 2, 3), keepdims=True)
    y_hat = (y - mean) * jax.lax.rsqrt(var + BN_EPS)
    return y_hat * gamma.reshape(1, -1, 1, 1) + beta.reshape(1, -1, 1, 1)


if __name__ == "__main__":
    key = jax.random.PRNGKey(0)
    kx, kw, kg, kb = jax.random.split(key, 4)

    N, Cin, H, W = 2, 4, 16, 16
    Cout = 16

    x = jax.random.normal(kx, (N, Cin, H, W), dtype=jnp.float32)
    # deterministic synthetic parameters (Conv2d weight OIHW, BN gamma/beta)
    w = jax.random.normal(kw, (Cout, Cin, 3, 3), dtype=jnp.float32) * 0.1
    gamma = 1.0 + 0.1 * jax.random.normal(kg, (Cout,), dtype=jnp.float32)
    beta = 0.1 * jax.random.normal(kb, (Cout,), dtype=jnp.float32)

    out = stem1_imagenet_forward(x, w, gamma, beta)
    out = jax.block_until_ready(out)

    ref = _reference(x, w, gamma, beta)
    assert out.shape == (N, Cout, H // 2, W // 2), out.shape
    max_err = float(jnp.max(jnp.abs(out - ref)))
    # bf16 matmul operands (f32 accumulation / f32 BN math) -> small tolerance vs f32 ref.
    assert jnp.allclose(out, ref, atol=2e-2, rtol=2e-2), max_err

    print("KERNEL_OK")
</pallas_src>

<mosaic_0001>
module attributes {stable_mosaic.version = 11 : i64} {
  func.func @_stats_kernel(%arg0: i32, %arg1: i32, %arg2: memref<1x8x9x16xbf16, #tpu.memory_space<vmem>>, %arg3: memref<1x1x9x16xbf16, #tpu.memory_space<vmem>>, %arg4: memref<4x16x128xbf16, #tpu.memory_space<vmem>>, %arg5: memref<1x1x128xf32, #tpu.memory_space<vmem>>, %arg6: memref<1x1x128xf32, #tpu.memory_space<vmem>>) attributes {dimension_semantics = [#tpu.dimension_semantics<parallel>, #tpu.dimension_semantics<arbitrary>], iteration_bounds = array<i64: 2, 1>, scalar_prefetch = 0 : i64, scratch_operands = 0 : i64, tpu.core_type = #tpu.core_type<tc>, window_params = [{transform_indices = @transform_0, window_bounds = array<i64: 1, 8, 9, 16>}, {transform_indices = @transform_1, window_bounds = array<i64: 1, 1, 9, 16>}, {pipeline_mode = #tpu.pipeline_mode<synchronous>, transform_indices = @transform_2, window_bounds = array<i64: 4, 16, 128>}, {transform_indices = @transform_3, window_bounds = array<i64: 1, 1, 128>}, {transform_indices = @transform_4, window_bounds = array<i64: 1, 1, 128>}]} {
    %c0 = arith.constant 0 : index
    %c0_0 = arith.constant 0 : index
    %c0_1 = arith.constant 0 : index
    %c0_2 = arith.constant 0 : index
    %0 = vector.load %arg2[%c0, %c0_0, %c0_1, %c0_2] : memref<1x8x9x16xbf16, #tpu.memory_space<vmem>>, vector<1x8x9x16xbf16>
    %1 = vector.shape_cast %0 : vector<1x8x9x16xbf16> to vector<8x9x16xbf16>
    %2 = arith.extf %1 : vector<8x9x16xbf16> to vector<8x9x16xf32>
    %cst = arith.constant 0.000000e+00 : f32
    %3 = vector.broadcast %cst : f32 to vector<8x9x16xf32>
    %4 = arith.maximumf %2, %3 : vector<8x9x16xf32>
    %5 = arith.truncf %4 : vector<8x9x16xf32> to vector<8x9x16xbf16>
    %c0_3 = arith.constant 0 : index
    %c0_4 = arith.constant 0 : index
    %c0_5 = arith.constant 0 : index
    %c0_6 = arith.constant 0 : index
    %6 = vector.load %arg3[%c0_3, %c0_4, %c0_5, %c0_6] : memref<1x1x9x16xbf16, #tpu.memory_space<vmem>>, vector<1x1x9x16xbf16>
    %7 = vector.shape_cast %6 : vector<1x1x9x16xbf16> to vector<1x9x16xbf16>
    %8 = arith.extf %7 : vector<1x9x16xbf16> to vector<1x9x16xf32>
    %cst_7 = arith.constant 0.000000e+00 : f32
    %9 = vector.broadcast %cst_7 : f32 to vector<1x9x16xf32>
    %10 = arith.maximumf %8, %9 : vector<1x9x16xf32>
    %11 = arith.truncf %10 : vector<1x9x16xf32> to vector<1x9x16xbf16>
    %12 = vector.extract_strided_slice %5 {offsets = [1, 0, 0], sizes = [7, 9, 16], strides = [1, 1, 1]} : vector<8x9x16xbf16> to vector<7x9x16xbf16>
    %13 = tpu.concatenate %12, %11 in 0 : vector<7x9x16xbf16>, vector<1x9x16xbf16> -> vector<8x9x16xbf16>
    %cst_8 = arith.constant 0.000000e+00 : f32
    %14 = vector.broadcast %cst_8 : f32 to vector<8x8x128xf32>
    %15 = vector.extract_strided_slice %5 {offsets = [0, 0, 0], sizes = [8, 8, 16], strides = [1, 1, 1]} : vector<8x9x16xbf16> to vector<8x8x16xbf16>
    %c0_9 = arith.constant 0 : index
    %c0_10 = arith.constant 0 : index
    %c0_11 = arith.constant 0 : index
    %16 = vector.load %arg4[%c0_9, %c0_10, %c0_11] : memref<4x16x128xbf16, #tpu.memory_space<vmem>>, vector<1x16x128xbf16>
    %17 = vector.shape_cast %16 : vector<1x16x128xbf16> to vector<16x128xbf16>
    %18 = vector.shape_cast %17 : vector<16x128xbf16> to vector<1x16x128xbf16>
    %19 = vector.broadcast %18 : vector<1x16x128xbf16> to vector<8x16x128xbf16>
    "tpu.trace_start"() <{level = 10 : i32, message = "rwk,rkc->rwc"}> : () -> ()
    %cst_12 = arith.constant dense<0.000000e+00> : vector<8x8x128xf32>
    %20 = tpu.matmul %15, %19, %cst_12 {dimension_numbers = #tpu.dot_dimension_numbers<[2], [1], [1], [2], [0, 0, 0, 1, 1, 2], [0], [0]>} : vector<8x8x16xbf16>, vector<8x16x128xbf16>, vector<8x8x128xf32> -> vector<8x8x128xf32>
    "tpu.trace_stop"() : () -> ()
    %21 = arith.addf %14, %20 : vector<8x8x128xf32>
    %22 = vector.extract_strided_slice %5 {offsets = [0, 1, 0], sizes = [8, 8, 16], strides = [1, 1, 1]} : vector<8x9x16xbf16> to vector<8x8x16xbf16>
    %c1 = arith.constant 1 : index
    %c0_13 = arith.constant 0 : index
    %c0_14 = arith.constant 0 : index
    %23 = vector.load %arg4[%c1, %c0_13, %c0_14] : memref<4x16x128xbf16, #tpu.memory_space<vmem>>, vector<1x16x128xbf16>
    %24 = vector.shape_cast %23 : vector<1x16x128xbf16> to vector<16x128xbf16>
    %25 = vector.shape_cast %24 : vector<16x128xbf16> to vector<1x16x128xbf16>
    %26 = vector.broadcast %25 : vector<1x16x128xbf16> to vector<8x16x128xbf16>
    "tpu.trace_start"() <{level = 10 : i32, message = "rwk,rkc->rwc"}> : () -> ()
    %cst_15 = arith.constant dense<0.000000e+00> : vector<8x8x128xf32>
    %27 = tpu.matmul %22, %26, %cst_15 {dimension_numbers = #tpu.dot_dimension_numbers<[2], [1], [1], [2], [0, 0, 0, 1, 1, 2], [0], [0]>} : vector<8x8x16xbf16>, vector<8x16x128xbf16>, vector<8x8x128xf32> -> vector<8x8x128xf32>
    "tpu.trace_stop"() : () -> ()
    %28 = arith.addf %21, %27 : vector<8x8x128xf32>
    %29 = vector.extract_strided_slice %13 {offsets = [0, 0, 0], sizes = [8, 8, 16], strides = [1, 1, 1]} : vector<8x9x16xbf16> to vector<8x8x16xbf16>
    %c2 = arith.constant 2 : index
    %c0_16 = arith.constant 0 : index
    %c0_17 = arith.constant 0 : index
    %30 = vector.load %arg4[%c2, %c0_16, %c0_17] : memref<4x16x128xbf16, #tpu.memory_space<vmem>>, vector<1x16x128xbf16>
    %31 = vector.shape_cast %30 : vector<1x16x128xbf16> to vector<16x128xbf16>
    %32 = vector.shape_cast %31 : vector<16x128xbf16> to vector<1x16x128xbf16>
    %33 = vector.broadcast %32 : vector<1x16x128xbf16> to vector<8x16x128xbf16>
    "tpu.trace_start"() <{level = 10 : i32, message = "rwk,rkc->rwc"}> : () -> ()
    %cst_18 = arith.constant dense<0.000000e+00> : vector<8x8x128xf32>
    %34 = tpu.matmul %29, %33, %cst_18 {dimension_numbers = #tpu.dot_dimension_numbers<[2], [1], [1], [2], [0, 0, 0, 1, 1, 2], [0], [0]>} : vector<8x8x16xbf16>, vector<8x16x128xbf16>, vector<8x8x128xf32> -> vector<8x8x128xf32>
    "tpu.trace_stop"() : () -> ()
    %35 = arith.addf %28, %34 : vector<8x8x128xf32>
    %36 = vector.extract_strided_slice %13 {offsets = [0, 1, 0], sizes = [8, 8, 16], strides = [1, 1, 1]} : vector<8x9x16xbf16> to vector<8x8x16xbf16>
    %c3 = arith.constant 3 : index
    %c0_19 = arith.constant 0 : index
    %c0_20 = arith.constant 0 : index
    %37 = vector.load %arg4[%c3, %c0_19, %c0_20] : memref<4x16x128xbf16, #tpu.memory_space<vmem>>, vector<1x16x128xbf16>
    %38 = vector.shape_cast %37 : vector<1x16x128xbf16> to vector<16x128xbf16>
    %39 = vector.shape_cast %38 : vector<16x128xbf16> to vector<1x16x128xbf16>
    %40 = vector.broadcast %39 : vector<1x16x128xbf16> to vector<8x16x128xbf16>
    "tpu.trace_start"() <{level = 10 : i32, message = "rwk,rkc->rwc"}> : () -> ()
    %cst_21 = arith.constant dense<0.000000e+00> : vector<8x8x128xf32>
    %41 = tpu.matmul %36, %40, %cst_21 {dimension_numbers = #tpu.dot_dimension_numbers<[2], [1], [1], [2], [0, 0, 0, 1, 1, 2], [0], [0]>} : vector<8x8x16xbf16>, vector<8x16x128xbf16>, vector<8x8x128xf32> -> vector<8x8x128xf32>
    "tpu.trace_stop"() : () -> ()
    %42 = arith.addf %35, %41 : vector<8x8x128xf32>
    %cst_22 = arith.constant dense<0.000000e+00> : vector<8x128xf32>
    %43 = vector.multi_reduction <add>, %42, %cst_22 [0] : vector<8x8x128xf32> to vector<8x128xf32>
    %cst_23 = arith.constant dense<0.000000e+00> : vector<128xf32>
    %44 = vector.multi_reduction <add>, %43, %cst_23 [0] : vector<8x128xf32> to vector<128xf32>
    %45 = vector.shape_cast %44 : vector<128xf32> to vector<1x128xf32>
    %46 = arith.mulf %42, %42 : vector<8x8x128xf32>
    %cst_24 = arith.constant dense<0.000000e+00> : vector<8x128xf32>
    %47 = vector.multi_reduction <add>, %46, %cst_24 [0] : vector<8x8x128xf32> to vector<8x128xf32>
    %cst_25 = arith.constant dense<0.000000e+00> : vector<128xf32>
    %48 = vector.multi_reduction <add>, %47, %cst_25 [0] : vector<8x128xf32> to vector<128xf32>
    %49 = vector.shape_cast %48 : vector<128xf32> to vector<1x128xf32>
    %c0_i32 = arith.constant 0 : i32
    %50 = arith.cmpi eq, %arg1, %c0_i32 : i32
    %51 = arith.extui %50 : i1 to i32
    %c0_i32_26 = arith.constant 0 : i32
    %52 = arith.cmpi ne, %51, %c0_i32_26 : i32
    scf.if %52 {
      %cst_39 = arith.constant 0.000000e+00 : f32
      %65 = vector.broadcast %cst_39 : f32 to vector<1x1x128xf32>
      %c0_40 = arith.constant 0 : index
      %c0_41 = arith.constant 0 : index
      %c0_42 = arith.constant 0 : index
      %66 = vector.load %arg5[%c0_40, %c0_41, %c0_42] : memref<1x1x128xf32, #tpu.memory_space<vmem>>, vector<1x1x128xf32>
      tpu.vector_store %arg5[%c0_40, %c0_41, %c0_42], %65 {strides = array<i32>} : memref<1x1x128xf32, #tpu.memory_space<vmem>>, vector<1x1x128xf32>,
      %cst_43 = arith.constant 0.000000e+00 : f32
      %67 = vector.broadcast %cst_43 : f32 to vector<1x1x128xf32>
      %c0_44 = arith.constant 0 : index
      %c0_45 = arith.constant 0 : index
      %c0_46 = arith.constant 0 : index
      %68 = vector.load %arg6[%c0_44, %c0_45, %c0_46] : memref<1x1x128xf32, #tpu.memory_space<vmem>>, vector<1x1x128xf32>
      tpu.vector_store %arg6[%c0_44, %c0_45, %c0_46], %67 {strides = array<i32>} : memref<1x1x128xf32, #tpu.memory_space<vmem>>, vector<1x1x128xf32>,
    } else {
    }
    %c0_27 = arith.constant 0 : index
    %c0_28 = arith.constant 0 : index
    %c0_29 = arith.constant 0 : index
    %53 = vector.load %arg5[%c0_27, %c0_28, %c0_29] : memref<1x1x128xf32, #tpu.memory_space<vmem>>, vector<1x1x128xf32>
    %54 = vector.shape_cast %53 : vector<1x1x128xf32> to vector<1x128xf32>
    %55 = arith.addf %54, %45 : vector<1x128xf32>
    %c0_30 = arith.constant 0 : index
    %c0_31 = arith.constant 0 : index
    %c0_32 = arith.constant 0 : index
    %56 = vector.load %arg5[%c0_30, %c0_31, %c0_32] : memref<1x1x128xf32, #tpu.memory_space<vmem>>, vector<1x1x128xf32>
    %57 = vector.shape_cast %56 : vector<1x1x128xf32> to vector<1x128xf32>
    %58 = vector.shape_cast %55 : vector<1x128xf32> to vector<1x1x128xf32>
    tpu.vector_store %arg5[%c0_30, %c0_31, %c0_32], %58 {strides = array<i32>} : memref<1x1x128xf32, #tpu.memory_space<vmem>>, vector<1x1x128xf32>,
    %c0_33 = arith.constant 0 : index
    %c0_34 = arith.constant 0 : index
    %c0_35 = arith.constant 0 : index
    %59 = vector.load %arg6[%c0_33, %c0_34, %c0_35] : memref<1x1x128xf32, #tpu.memory_space<vmem>>, vector<1x1x128xf32>
    %60 = vector.shape_cast %59 : vector<1x1x128xf32> to vector<1x128xf32>
    %61 = arith.addf %60, %49 : vector<1x128xf32>
    %c0_36 = arith.constant 0 : index
    %c0_37 = arith.constant 0 : index
    %c0_38 = arith.constant 0 : index
    %62 = vector.load %arg6[%c0_36, %c0_37, %c0_38] : memref<1x1x128xf32, #tpu.memory_space<vmem>>, vector<1x1x128xf32>
    %63 = vector.shape_cast %62 : vector<1x1x128xf32> to vector<1x128xf32>
    %64 = vector.shape_cast %61 : vector<1x128xf32> to vector<1x1x128xf32>
    tpu.vector_store %arg6[%c0_36, %c0_37, %c0_38], %64 {strides = array<i32>} : memref<1x1x128xf32, #tpu.memory_space<vmem>>, vector<1x1x128xf32>,
    return
  }
  func.func @transform_0(%arg0: i32, %arg1: i32) -> (i32, i32, i32, i32) {
    %c0_i32 = arith.constant 0 : i32
    %c0_i32_0 = arith.constant 0 : i32
    %c0_i32_1 = arith.constant 0 : i32
    return %arg0, %arg1, %c0_i32, %c0_i32_0 : i32, i32, i32, i32
  }
  func.func @transform_1(%arg0: i32, %arg1: i32) -> (i32, i32, i32, i32) {
    %c1_i32 = arith.constant 1 : i32
    %0 = arith.addi %arg1, %c1_i32 : i32
    %c8_i32 = arith.constant 8 : i32
    %1 = arith.muli %0, %c8_i32 : i32
    %c0_i32 = arith.constant 0 : i32
    %c0_i32_0 = arith.constant 0 : i32
    %c0_i32_1 = arith.constant 0 : i32
    return %arg0, %1, %c0_i32, %c0_i32_0 : i32, i32, i32, i32
  }
  func.func @transform_2(%arg0: i32, %arg1: i32) -> (i32, i32, i32) {
    %c0_i32 = arith.constant 0 : i32
    %c0_i32_0 = arith.constant 0 : i32
    %c0_i32_1 = arith.constant 0 : i32
    %c0_i32_2 = arith.constant 0 : i32
    return %c0_i32, %c0_i32_0, %c0_i32_1 : i32, i32, i32
  }
  func.func @transform_3(%arg0: i32, %arg1: i32) -> (i32, i32, i32) {
    %c0_i32 = arith.constant 0 : i32
    %c0_i32_0 = arith.constant 0 : i32
    %c0_i32_1 = arith.constant 0 : i32
    return %arg0, %c0_i32, %c0_i32_0 : i32, i32, i32
  }
  func.func @transform_4(%arg0: i32, %arg1: i32) -> (i32, i32, i32) {
    %c0_i32 = arith.constant 0 : i32
    %c0_i32_0 = arith.constant 0 : i32
    %c0_i32_1 = arith.constant 0 : i32
    return %arg0, %c0_i32, %c0_i32_0 : i32, i32, i32
  }
}

module attributes {stable_mosaic.version = 11 : i64} {
  func.func @_apply_kernel(%arg0: i32, %arg1: i32, %arg2: memref<1x8x9x16xbf16, #tpu.memory_space<vmem>>, %arg3: memref<1x1x9x16xbf16, #tpu.memory_space<vmem>>, %arg4: memref<4x16x128xbf16, #tpu.memory_space<vmem>>, %arg5: memref<1x128xf32, #tpu.memory_space<vmem>>, %arg6: memref<1x128xf32, #tpu.memory_space<vmem>>, %arg7: memref<1x8x8x128xf32, #tpu.memory_space<vmem>>) attributes {dimension_semantics = [#tpu.dimension_semantics<parallel>, #tpu.dimension_semantics<parallel>], iteration_bounds = array<i64: 2, 1>, scalar_prefetch = 0 : i64, scratch_operands = 0 : i64, tpu.core_type = #tpu.core_type<tc>, window_params = [{transform_indices = @transform_0, window_bounds = array<i64: 1, 8, 9, 16>}, {transform_indices = @transform_1, window_bounds = array<i64: 1, 1, 9, 16>}, {pipeline_mode = #tpu.pipeline_mode<synchronous>, transform_indices = @transform_2, window_bounds = array<i64: 4, 16, 128>}, {pipeline_mode = #tpu.pipeline_mode<synchronous>, transform_indices = @transform_3, window_bounds = array<i64: 1, 128>}, {pipeline_mode = #tpu.pipeline_mode<synchronous>, transform_indices = @transform_4, window_bounds = array<i64: 1, 128>}, {transform_indices = @transform_5, window_bounds = array<i64: 1, 8, 8, 128>}]} {
    %c0 = arith.constant 0 : index
    %c0_0 = arith.constant 0 : index
    %c0_1 = arith.constant 0 : index
    %c0_2 = arith.constant 0 : index
    %0 = vector.load %arg2[%c0, %c0_0, %c0_1, %c0_2] : memref<1x8x9x16xbf16, #tpu.memory_space<vmem>>, vector<1x8x9x16xbf16>
    %1 = vector.shape_cast %0 : vector<1x8x9x16xbf16> to vector<8x9x16xbf16>
    %2 = arith.extf %1 : vector<8x9x16xbf16> to vector<8x9x16xf32>
    %cst = arith.constant 0.000000e+00 : f32
    %3 = vector.broadcast %cst : f32 to vector<8x9x16xf32>
    %4 = arith.maximumf %2, %3 : vector<8x9x16xf32>
    %5 = arith.truncf %4 : vector<8x9x16xf32> to vector<8x9x16xbf16>
    %c0_3 = arith.constant 0 : index
    %c0_4 = arith.constant 0 : index
    %c0_5 = arith.constant 0 : index
    %c0_6 = arith.constant 0 : index
    %6 = vector.load %arg3[%c0_3, %c0_4, %c0_5, %c0_6] : memref<1x1x9x16xbf16, #tpu.memory_space<vmem>>, vector<1x1x9x16xbf16>
    %7 = vector.shape_cast %6 : vector<1x1x9x16xbf16> to vector<1x9x16xbf16>
    %8 = arith.extf %7 : vector<1x9x16xbf16> to vector<1x9x16xf32>
    %cst_7 = arith.constant 0.000000e+00 : f32
    %9 = vector.broadcast %cst_7 : f32 to vector<1x9x16xf32>
    %10 = arith.maximumf %8, %9 : vector<1x9x16xf32>
    %11 = arith.truncf %10 : vector<1x9x16xf32> to vector<1x9x16xbf16>
    %12 = vector.extract_strided_slice %5 {offsets = [1, 0, 0], sizes = [7, 9, 16], strides = [1, 1, 1]} : vector<8x9x16xbf16> to vector<7x9x16xbf16>
    %13 = tpu.concatenate %12, %11 in 0 : vector<7x9x16xbf16>, vector<1x9x16xbf16> -> vector<8x9x16xbf16>
    %cst_8 = arith.constant 0.000000e+00 : f32
    %14 = vector.broadcast %cst_8 : f32 to vector<8x8x128xf32>
    %15 = vector.extract_strided_slice %5 {offsets = [0, 0, 0], sizes = [8, 8, 16], strides = [1, 1, 1]} : vector<8x9x16xbf16> to vector<8x8x16xbf16>
    %c0_9 = arith.constant 0 : index
    %c0_10 = arith.constant 0 : index
    %c0_11 = arith.constant 0 : index
    %16 = vector.load %arg4[%c0_9, %c0_10, %c0_11] : memref<4x16x128xbf16, #tpu.memory_space<vmem>>, vector<1x16x128xbf16>
    %17 = vector.shape_cast %16 : vector<1x16x128xbf16> to vector<16x128xbf16>
    %18 = vector.shape_cast %17 : vector<16x128xbf16> to vector<1x16x128xbf16>
    %19 = vector.broadcast %18 : vector<1x16x128xbf16> to vector<8x16x128xbf16>
    "tpu.trace_start"() <{level = 10 : i32, message = "rwk,rkc->rwc"}> : () -> ()
    %cst_12 = arith.constant dense<0.000000e+00> : vector<8x8x128xf32>
    %20 = tpu.matmul %15, %19, %cst_12 {dimension_numbers = #tpu.dot_dimension_numbers<[2], [1], [1], [2], [0, 0, 0, 1, 1, 2], [0], [0]>} : vector<8x8x16xbf16>, vector<8x16x128xbf16>, vector<8x8x128xf32> -> vector<8x8x128xf32>
    "tpu.trace_stop"() : () -> ()
    %21 = arith.addf %14, %20 : vector<8x8x128xf32>
    %22 = vector.extract_strided_slice %5 {offsets = [0, 1, 0], sizes = [8, 8, 16], strides = [1, 1, 1]} : vector<8x9x16xbf16> to vector<8x8x16xbf16>
    %c1 = arith.constant 1 : index
    %c0_13 = arith.constant 0 : index
    %c0_14 = arith.constant 0 : index
    %23 = vector.load %arg4[%c1, %c0_13, %c0_14] : memref<4x16x128xbf16, #tpu.memory_space<vmem>>, vector<1x16x128xbf16>
    %24 = vector.shape_cast %23 : vector<1x16x128xbf16> to vector<16x128xbf16>
    %25 = vector.shape_cast %24 : vector<16x128xbf16> to vector<1x16x128xbf16>
    %26 = vector.broadcast %25 : vector<1x16x128xbf16> to vector<8x16x128xbf16>
    "tpu.trace_start"() <{level = 10 : i32, message = "rwk,rkc->rwc"}> : () -> ()
    %cst_15 = arith.constant dense<0.000000e+00> : vector<8x8x128xf32>
    %27 = tpu.matmul %22, %26, %cst_15 {dimension_numbers = #tpu.dot_dimension_numbers<[2], [1], [1], [2], [0, 0, 0, 1, 1, 2], [0], [0]>} : vector<8x8x16xbf16>, vector<8x16x128xbf16>, vector<8x8x128xf32> -> vector<8x8x128xf32>
    "tpu.trace_stop"() : () -> ()
    %28 = arith.addf %21, %27 : vector<8x8x128xf32>
    %29 = vector.extract_strided_slice %13 {offsets = [0, 0, 0], sizes = [8, 8, 16], strides = [1, 1, 1]} : vector<8x9x16xbf16> to vector<8x8x16xbf16>
    %c2 = arith.constant 2 : index
    %c0_16 = arith.constant 0 : index
    %c0_17 = arith.constant 0 : index
    %30 = vector.load %arg4[%c2, %c0_16, %c0_17] : memref<4x16x128xbf16, #tpu.memory_space<vmem>>, vector<1x16x128xbf16>
    %31 = vector.shape_cast %30 : vector<1x16x128xbf16> to vector<16x128xbf16>
    %32 = vector.shape_cast %31 : vector<16x128xbf16> to vector<1x16x128xbf16>
    %33 = vector.broadcast %32 : vector<1x16x128xbf16> to vector<8x16x128xbf16>
    "tpu.trace_start"() <{level = 10 : i32, message = "rwk,rkc->rwc"}> : () -> ()
    %cst_18 = arith.constant dense<0.000000e+00> : vector<8x8x128xf32>
    %34 = tpu.matmul %29, %33, %cst_18 {dimension_numbers = #tpu.dot_dimension_numbers<[2], [1], [1], [2], [0, 0, 0, 1, 1, 2], [0], [0]>} : vector<8x8x16xbf16>, vector<8x16x128xbf16>, vector<8x8x128xf32> -> vector<8x8x128xf32>
    "tpu.trace_stop"() : () -> ()
    %35 = arith.addf %28, %34 : vector<8x8x128xf32>
    %36 = vector.extract_strided_slice %13 {offsets = [0, 1, 0], sizes = [8, 8, 16], strides = [1, 1, 1]} : vector<8x9x16xbf16> to vector<8x8x16xbf16>
    %c3 = arith.constant 3 : index
    %c0_19 = arith.constant 0 : index
    %c0_20 = arith.constant 0 : index
    %37 = vector.load %arg4[%c3, %c0_19, %c0_20] : memref<4x16x128xbf16, #tpu.memory_space<vmem>>, vector<1x16x128xbf16>
    %38 = vector.shape_cast %37 : vector<1x16x128xbf16> to vector<16x128xbf16>
    %39 = vector.shape_cast %38 : vector<16x128xbf16> to vector<1x16x128xbf16>
    %40 = vector.broadcast %39 : vector<1x16x128xbf16> to vector<8x16x128xbf16>
    "tpu.trace_start"() <{level = 10 : i32, message = "rwk,rkc->rwc"}> : () -> ()
    %cst_21 = arith.constant dense<0.000000e+00> : vector<8x8x128xf32>
    %41 = tpu.matmul %36, %40, %cst_21 {dimension_numbers = #tpu.dot_dimension_numbers<[2], [1], [1], [2], [0, 0, 0, 1, 1, 2], [0], [0]>} : vector<8x8x16xbf16>, vector<8x16x128xbf16>, vector<8x8x128xf32> -> vector<8x8x128xf32>
    "tpu.trace_stop"() : () -> ()
    %42 = arith.addf %35, %41 : vector<8x8x128xf32>
    %c0_22 = arith.constant 0 : index
    %c0_23 = arith.constant 0 : index
    %43 = vector.load %arg5[%c0_22, %c0_23] : memref<1x128xf32, #tpu.memory_space<vmem>>, vector<1x128xf32>
    %44 = vector.shape_cast %43 : vector<1x128xf32> to vector<1x1x128xf32>
    %45 = vector.broadcast %44 : vector<1x1x128xf32> to vector<8x8x128xf32>
    %46 = arith.mulf %42, %45 : vector<8x8x128xf32>
    %c0_24 = arith.constant 0 : index
    %c0_25 = arith.constant 0 : index
    %47 = vector.load %arg6[%c0_24, %c0_25] : memref<1x128xf32, #tpu.memory_space<vmem>>, vector<1x128xf32>
    %48 = vector.shape_cast %47 : vector<1x128xf32> to vector<1x1x128xf32>
    %49 = vector.broadcast %48 : vector<1x1x128xf32> to vector<8x8x128xf32>
    %50 = arith.addf %46, %49 : vector<8x8x128xf32>
    %c0_26 = arith.constant 0 : index
    %c0_27 = arith.constant 0 : index
    %c0_28 = arith.constant 0 : index
    %c0_29 = arith.constant 0 : index
    %51 = vector.load %arg7[%c0_26, %c0_27, %c0_28, %c0_29] : memref<1x8x8x128xf32, #tpu.memory_space<vmem>>, vector<1x8x8x128xf32>
    %52 = vector.shape_cast %51 : vector<1x8x8x128xf32> to vector<8x8x128xf32>
    %53 = vector.shape_cast %50 : vector<8x8x128xf32> to vector<1x8x8x128xf32>
    tpu.vector_store %arg7[%c0_26, %c0_27, %c0_28, %c0_29], %53 {strides = array<i32>} : memref<1x8x8x128xf32, #tpu.memory_space<vmem>>, vector<1x8x8x128xf32>,
    return
  }
  func.func @transform_0(%arg0: i32, %arg1: i32) -> (i32, i32, i32, i32) {
    %c0_i32 = arith.constant 0 : i32
    %c0_i32_0 = arith.constant 0 : i32
    %c0_i32_1 = arith.constant 0 : i32
    return %arg0, %arg1, %c0_i32, %c0_i32_0 : i32, i32, i32, i32
  }
  func.func @transform_1(%arg0: i32, %arg1: i32) -> (i32, i32, i32, i32) {
    %c1_i32 = arith.constant 1 : i32
    %0 = arith.addi %arg1, %c1_i32 : i32
    %c8_i32 = arith.constant 8 : i32
    %1 = arith.muli %0, %c8_i32 : i32
    %c0_i32 = arith.constant 0 : i32
    %c0_i32_0 = arith.constant 0 : i32
    %c0_i32_1 = arith.constant 0 : i32
    return %arg0, %1, %c0_i32, %c0_i32_0 : i32, i32, i32, i32
  }
  func.func @transform_2(%arg0: i32, %arg1: i32) -> (i32, i32, i32) {
    %c0_i32 = arith.constant 0 : i32
    %c0_i32_0 = arith.constant 0 : i32
    %c0_i32_1 = arith.constant 0 : i32
    %c0_i32_2 = arith.constant 0 : i32
    return %c0_i32, %c0_i32_0, %c0_i32_1 : i32, i32, i32
  }
  func.func @transform_3(%arg0: i32, %arg1: i32) -> (i32, i32) {
    %c0_i32 = arith.constant 0 : i32
    %c0_i32_0 = arith.constant 0 : i32
    %c0_i32_1 = arith.constant 0 : i32
    return %c0_i32, %c0_i32_0 : i32, i32
  }
  func.func @transform_4(%arg0: i32, %arg1: i32) -> (i32, i32) {
    %c0_i32 = arith.constant 0 : i32
    %c0_i32_0 = arith.constant 0 : i32
    %c0_i32_1 = arith.constant 0 : i32
    return %c0_i32, %c0_i32_0 : i32, i32
  }
  func.func @transform_5(%arg0: i32, %arg1: i32) -> (i32, i32, i32, i32) {
    %c0_i32 = arith.constant 0 : i32
    %c0_i32_0 = arith.constant 0 : i32
    %c0_i32_1 = arith.constant 0 : i32
    return %arg0, %arg1, %c0_i32, %c0_i32_0 : i32, i32, i32, i32
  }
}

</mosaic_0001>

<bundles_post_ra>
// kernel: stem1_imagenet_forward.2
= control target key start
LH: loop header
LB: loop body
LE: loop exit
PB: predicated region body
PF: predicated region fallthrough
CT: control target
= control target key end

     0   :  { %s2360_s15 = smov 0   ;;  %s2362_s16 = smov 0   ;;  %s2689_s0 = inlined_call_operand.vmem [shape: bf16[2,9,9,16], index: 0, kind: input, shape index: {}, may-alias: {0,1}]   ;;  %s2690_s1 = inlined_call_operand.vmem [shape: bf16[2,9,9,16], index: 1, kind: input, shape index: {}, may-alias: {0,1}]   ;;  %s2691_s2 = inlined_call_operand.vmem [shape: bf16[4,16,128], index: 2, kind: input, shape index: {}]   ;;  %s2692_s3 = inlined_call_operand.vmem [shape: f32[2,1,128], index: 3, kind: output, shape index: {0}]   ;;  %s2693_s4 = inlined_call_operand.vmem [shape: f32[2,1,128], index: 4, kind: output, shape index: {1}]  }
   0x1   :  { %s2364_s17 = smov 0  }
   0x2 LB: > { %s27_s18 = sadd.s32 1, %s2327_s16  ;;  %p1971_p0 = scmp.ge.s32.totalorder %s2331_s17, 1  ;;  %s2331_s17 = sphi %s2364_s17, %s15_s17   ;;  %s2327_s16 = sphi %s2362_s16, %s2695_s16   ;;  %s2323_s15 = sphi %s2360_s15, %s2694_s15  }
   0x3   : > { %p29_p1 = scmp.ge.s32.totalorder %s27_s18, 2  ;;  %p219_p2 = scmp.lt.s32.totalorder %s2331_s17, 3 }
   0x5   : > { %s2697_s18 = smov (%p29_p1, %s27_s18), 0  ;;  %p220_p3 = pnand %p1971_p0, %p219_p2 }
   0x6   : > { %p273_p4 = scmp.lt.s32.totalorder (!%p220_p3), %s2323_s15, 1 }
   0x7   : > { %223 = sbr.rel (%p220_p3) target bundleno = 365 (0x16d), region = 32 }
   0xc   : > { %v2381_v0 = vld [vmem:[%s2691_s2 + $0x8] sm:$0xff]   ;;  %v2333_v1 = vmov 0.0   ;;  %vm2334_vm0 = vmmov 0   ;;  %s2699_s15 = smov (!%p273_p4, %s2323_s15), 1  ;;  %vm389_vm1 = vcmask 130048  }
   0xd   : > { %2084 = vmatprep.subr.bf16.mxu0 %v2333_v1  ;;  %2090 = vmatprep.subr.bf16.mxu1 %v2333_v1  ;;  %s2276_s21 = smul.u32 72, %s2699_s15  ;;  %s2634_s11 = scalar_lea.vmem %s2692_s3, %s2699_s15 }
   0xe   : > { %2085 = vmatpush3.bf16.msra.mxu0 %v2381_v0  ;;  %2091 = vmatpush3.bf16.msra.mxu1 %v2381_v0  ;;  %s2640_s14 = scalar_lea.vmem %s2693_s4, %s2699_s15  ;;  %1849 = vst [vmem:[%s2634_s11] sm:$0x1] %v2333_v1 }
   0xf   : > { %2086 = vmatprep.mubr.msk.bf16.mxu0 %vm2334_vm0, %v2333_v1  ;;  %2092 = vmatprep.mubr.msk.bf16.mxu1 %vm2334_vm0, %v2333_v1  ;;  %s2401_s24 = scalar_lea.vmem %s2689_s0, %s2276_s21  ;;  %s2019_s29 = sadd.s32 64, %s2276_s21  ;;  %1850 = vst [vmem:[%s2640_s14] sm:$0x1] %v2333_v1 }
  0x10   : > { %2096 = vmatprep.subr.bf16.mxu0 %v2333_v1  ;;  %2102 = vmatprep.subr.bf16.mxu1 %v2333_v1  ;;  %v308_v2 = vld [vmem:[%s2401_s24] ss:$8 sps:$4 sm:$0xff]   ;;  %v309_v3 = vld [vmem:[%s2401_s24 + $0x4] sm:$0x1]  ;;  %v311_v4 = vld [vmem:[%s2401_s24 + $0xc] sm:$0x1]  ;;  %s298_s6 = scalar_lea.vmem %s2690_s1, %s2019_s29 }
  0x11   : > { %v324_v5 = vunpack.c.l.bf16 %v308_v2  ;;  %v325_v6 = vunpack.c.l.bf16 %v309_v3  ;;  %v326_v7 = vunpack.c.h.bf16 %v308_v2  ;;  %v327_v8 = vunpack.c.l.bf16 %v311_v4  ;;  %v312_v9 = vld [vmem:[%s2401_s24 + $0x10] ss:$8 sps:$4 sm:$0xff]   ;;  %v313_v10 = vld [vmem:[%s2401_s24 + $0x14] sm:$0x1]  ;;  %v315_v11 = vld [vmem:[%s2401_s24 + $0x1c] sm:$0x1] }
  0x12   : > { %v328_v12 = vunpack.c.l.bf16 %v312_v9  ;;  %v329_v13 = vunpack.c.l.bf16 %v313_v10  ;;  %v330_v14 = vunpack.c.h.bf16 %v312_v9  ;;  %v331_v15 = vunpack.c.l.bf16 %v315_v11  ;;  %v316_v16 = vld [vmem:[%s2401_s24 + $0x20] ss:$8 sps:$4 sm:$0xff]   ;;  %v317_v17 = vld [vmem:[%s2401_s24 + $0x24] sm:$0x1]  ;;  %v319_v22 = vld [vmem:[%s2401_s24 + $0x2c] sm:$0x1] }
  0x13   : > { %v340_v18 = vmax.f32 %v324_v5, 0.0  ;;  %v341_v19 = vmax.f32 %v325_v6, 0.0  ;;  %v342_v20 = vmax.f32 %v326_v7, 0.0  ;;  %v343_v21 = vmax.f32 %v327_v8, 0.0  ;;  %v320_v45 = vld [vmem:[%s2401_s24 + $0x30] ss:$8 sps:$4 sm:$0xff]  }
  0x14   : > { %v344_v23 = vmax.f32 %v328_v12, 0.0  ;;  %v345_v24 = vmax.f32 %v329_v13, 0.0  ;;  %v346_v25 = vmax.f32 %v330_v14, 0.0  ;;  %v347_v26 = vmax.f32 %v331_v15, 0.0  ;;  %v321_v48 = vld [vmem:[%s2401_s24 + $0x34] sm:$0x1] }
  0x15   : > { %v2412_v27 = vpack.c.bf16 %v341_v19, %v340_v18  ;;  %v2414_v28 = vpack.c.bf16 %v343_v21, %v342_v20  ;;  %v332_v29 = vunpack.c.l.bf16 %v316_v16  ;;  %v333_v30 = vunpack.c.l.bf16 %v317_v17  ;;  %v323_v53 = vld [vmem:[%s2401_s24 + $0x3c] sm:$0x1] }
  0x16   : > { %v2416_v31 = vpack.c.bf16 %v345_v24, %v344_v23  ;;  %v2418_v32 = vpack.c.bf16 %v347_v26, %v346_v25  ;;  %v334_v33 = vunpack.c.h.bf16 %v316_v16  ;;  %v335_v34 = vunpack.c.l.bf16 %v319_v22  ;;  %v2306_v24 = vld [vmem:[%s2691_s2] sm:$0xff]  }
  0x17   : > { %v377_v35 = vshrl.u32 %v2412_v27, 16  ;;  %v379_v36 = vshll.u32 %v2412_v27, 16  ;;  %v434_v37 = vshrl.u32 %v2414_v28, 16  ;;  %v436_v38 = vshll.u32 %v2414_v28, 16  ;;  %v364_v25 = vld [vmem:[%s298_s6] sm:$0xf] }
  0x18   : > { %v486_v39 = vshll.u32 %v2416_v31, 16  ;;  %v536_v40 = vshll.u32 %v2418_v32, 16  ;;  %v348_v43 = vmax.f32 %v332_v29, 0.0  ;;  %v349_v44 = vmax.f32 %v333_v30, 0.0  ;;  %v365_v26 = vld [vmem:[%s298_s6 + $0x4] sm:$0x1] }
  0x19   : > { %v381_v41 = vrot.slane %v379_v36, 1  ;;  %v438_v42 = vrot.slane %v436_v38, 1  ;;  %v350_v46 = vmax.f32 %v334_v33, 0.0  ;;  %v351_v47 = vmax.f32 %v335_v34, 0.0 }
  0x1a   : > { %v484_v51 = vshrl.u32 %v2416_v31, 16  ;;  %v534_v52 = vshrl.u32 %v2418_v32, 16  ;;  %v488_v54 = vrot.slane %v486_v39, 1  ;;  %v538_v55 = vrot.slane %v536_v40, 1 }
  0x1b   : > { %v382_v49 = vor.u32 %v381_v41, %v377_v35  ;;  %v2428_v50 = vor.u32 %v438_v42, %v434_v37  ;;  %v2433_v56 = vpack.c.bf16 %v349_v44, %v348_v43  ;;  %v336_v57 = vunpack.c.l.bf16 %v320_v45 }
  0x1c   : > { %v2438_v58 = vpack.c.bf16 %v351_v47, %v350_v46  ;;  %v337_v59 = vunpack.c.l.bf16 %v321_v48  ;;  %v338_v60 = vunpack.c.h.bf16 %v320_v45  ;;  %v339_v61 = vunpack.c.l.bf16 %v323_v53 }
  0x1d   : > { %2087 = vmatmul.mubr.msk.bf16.vlgmr.msra.gmra.mxu0 %vm389_vm1, %v382_v49  ;;  %2093 = vmatmul.mubr.msk.bf16.vlgmr.msra.gmra.mxu1 %vm389_vm1, %v2428_v50  ;;  %v2447_v62 = vor.u32 %v488_v54, %v484_v51  ;;  %v2449_v63 = vor.u32 %v538_v55, %v534_v52  ;;  %v586_v2 = vshll.u32 %v2433_v56, 16  ;;  %v352_v3 = vmax.f32 %v336_v57, 0.0 }
  0x1e   : > { %2097 = vmatpush3.bf16.msra.mxu0 %v2381_v0  ;;  %2103 = vmatpush3.bf16.msra.mxu1 %v2381_v0  ;;  %v636_v4 = vshll.u32 %v2438_v58, 16  ;;  %v353_v5 = vmax.f32 %v337_v59, 0.0  ;;  %v354_v6 = vmax.f32 %v338_v60, 0.0  ;;  %v355_v7 = vmax.f32 %v339_v61, 0.0 }
  0x1f   : > { %2098 = vmatprep.mubr.msk.bf16.mxu0 %vm2334_vm0, %v2333_v1  ;;  %2104 = vmatprep.mubr.msk.bf16.mxu1 %vm2334_vm0, %v2333_v1  ;;  %v584_v8 = vshrl.u32 %v2433_v56, 16  ;;  %v634_v9 = vshrl.u32 %v2438_v58, 16  ;;  %v588_v10 = vrot.slane %v586_v2, 1 }
  0x20   : > { %2108 = vmatprep.subr.bf16.mxu0 %v2333_v1  ;;  %2114 = vmatprep.subr.bf16.mxu1 %v2333_v1  ;;  %v638_v11 = vrot.slane %v636_v4, 1  ;;  %v2460_v12 = vpack.c.bf16 %v353_v5, %v352_v3  ;;  %v2462_v13 = vpack.c.bf16 %v355_v7, %v354_v6 }
  0x21   : > { %v2472_v14 = vor.u32 %v588_v10, %v584_v8 }
  0x22   : > { %v2474_v15 = vor.u32 %v638_v11, %v634_v9  ;;  %v686_v16 = vshll.u32 %v2460_v12, 16  ;;  %v736_v17 = vshll.u32 %v2462_v13, 16  ;;  %v684_v18 = vshrl.u32 %v2460_v12, 16 }
  0x23   : > { %v734_v20 = vshrl.u32 %v2462_v13, 16 }
  0x24   : > { %v688_v19 = vrot.slane %v686_v16, 1  ;;  %v738_v21 = vrot.slane %v736_v17, 1 }
  0x25   : > { %2099 = vmatmul.mubr.msk.bf16.vlgmr.msra.gmra.mxu0 %vm389_vm1, %v2447_v62  ;;  %2105 = vmatmul.mubr.msk.bf16.vlgmr.msra.gmra.mxu1 %vm389_vm1, %v2449_v63 }
  0x26   : > { %2109 = vmatpush3.bf16.msra.mxu0 %v2381_v0  ;;  %2115 = vmatpush3.bf16.msra.mxu1 %v2381_v0  ;;  %v2492_v22 = vor.u32 %v688_v19, %v684_v18  ;;  %v2494_v23 = vor.u32 %v738_v21, %v734_v20 }
  0x27   : > { %2110 = vmatprep.mubr.msk.bf16.mxu0 %vm2334_vm0, %v2333_v1  ;;  %2116 = vmatprep.mubr.msk.bf16.mxu1 %vm2334_vm0, %v2333_v1 }
  0x28   : > { %2120 = vmatprep.subr.bf16.mxu0 %v2333_v1  ;;  %2126 = vmatprep.subr.bf16.mxu1 %v2333_v1 }
  0x2d   : > { %2111 = vmatmul.mubr.msk.bf16.vlgmr.msra.gmra.mxu0 %vm389_vm1, %v2472_v14  ;;  %2117 = vmatmul.mubr.msk.bf16.vlgmr.msra.gmra.mxu1 %vm389_vm1, %v2474_v15 }
  0x2e   : > { %2121 = vmatpush3.bf16.msra.mxu0 %v2381_v0  ;;  %2127 = vmatpush3.bf16.msra.mxu1 %v2381_v0  ;;  %v2307_v0 = vld [vmem:[%s2691_s2 + $0x10] sm:$0xff]  }
  0x2f   : > { %2122 = vmatprep.mubr.msk.bf16.mxu0 %vm2334_vm0, %v2333_v1  ;;  %2128 = vmatprep.mubr.msk.bf16.mxu1 %vm2334_vm0, %v2333_v1 }
  0x30   : > { %2132 = vmatprep.subr.bf16.mxu0 %v2333_v1  ;;  %2138 = vmatprep.subr.bf16.mxu1 %v2333_v1 }
  0x35   : > { %2123 = vmatmul.mubr.msk.bf16.vlgmr.msra.gmra.mxu0 %vm389_vm1, %v2492_v22  ;;  %2129 = vmatmul.mubr.msk.bf16.vlgmr.msra.gmra.mxu1 %vm389_vm1, %v2494_v23 }
  0x36   : > { %2133 = vmatpush3.bf16.msra.mxu0 %v2306_v24  ;;  %2139 = vmatpush3.bf16.msra.mxu1 %v2306_v24 }
  0x37   : > { %2134 = vmatprep.mubr.msk.bf16.mxu0 %vm2334_vm0, %v2333_v1  ;;  %2140 = vmatprep.mubr.msk.bf16.mxu1 %vm2334_vm0, %v2333_v1 }
  0x38   : > { %2144 = vmatprep.subr.bf16.mxu0 %v2333_v1  ;;  %2150 = vmatprep.subr.bf16.mxu1 %v2333_v1 }
  0x3d   : > { %2135 = vmatmul.mubr.msk.bf16.vlgmr.msra.gmra.mxu0 %vm389_vm1, %v2412_v27  ;;  %2141 = vmatmul.mubr.msk.bf16.vlgmr.msra.gmra.mxu1 %vm389_vm1, %v2414_v28  ;;  %v366_v27 = vunpack.c.l.bf16 %v364_v25 }
  0x3e   : > { %2145 = vmatpush3.bf16.msra.mxu0 %v2306_v24  ;;  %2151 = vmatpush3.bf16.msra.mxu1 %v2306_v24 }
  0x3f   : > { %2146 = vmatprep.mubr.msk.bf16.mxu0 %vm2334_vm0, %v2333_v1  ;;  %2152 = vmatprep.mubr.msk.bf16.mxu1 %vm2334_vm0, %v2333_v1  ;;  %v368_v29 = vmax.f32 %v366_v27, 0.0 }
  0x40   : > { %2156 = vmatprep.subr.bf16.mxu0 %v2333_v1  ;;  %2162 = vmatprep.subr.bf16.mxu1 %v2333_v1 }
  0x45   : > { %2147 = vmatmul.mubr.msk.bf16.vlgmr.msra.gmra.mxu0 %vm389_vm1, %v2416_v31  ;;  %2153 = vmatmul.mubr.msk.bf16.vlgmr.msra.gmra.mxu1 %vm389_vm1, %v2418_v32 }
  0x46   : > { %2157 = vmatpush3.bf16.msra.mxu0 %v2306_v24  ;;  %2163 = vmatpush3.bf16.msra.mxu1 %v2306_v24 }
  0x47   : > { %2158 = vmatprep.mubr.msk.bf16.mxu0 %vm2334_vm0, %v2333_v1  ;;  %2164 = vmatprep.mubr.msk.bf16.mxu1 %vm2334_vm0, %v2333_v1 }
  0x48   : > { %2168 = vmatprep.subr.bf16.mxu0 %v2333_v1  ;;  %2174 = vmatprep.subr.bf16.mxu1 %v2333_v1 }
  0x4d   : > { %2159 = vmatmul.mubr.msk.bf16.vlgmr.msra.gmra.mxu0 %vm389_vm1, %v2433_v56  ;;  %2165 = vmatmul.mubr.msk.bf16.vlgmr.msra.gmra.mxu1 %vm389_vm1, %v2438_v58 }
  0x4e   : > { %2169 = vmatpush3.bf16.msra.mxu0 %v2306_v24  ;;  %2175 = vmatpush3.bf16.msra.mxu1 %v2306_v24 }
  0x4f   : > { %2170 = vmatprep.mubr.msk.bf16.mxu0 %vm2334_vm0, %v2333_v1  ;;  %2176 = vmatprep.mubr.msk.bf16.mxu1 %vm2334_vm0, %v2333_v1 }
  0x50   : > { %2180 = vmatprep.subr.bf16.mxu0 %v2333_v1  ;;  %2186 = vmatprep.subr.bf16.mxu1 %v2333_v1 }
  0x55   : > { %2171 = vmatmul.mubr.msk.bf16.vlgmr.msra.gmra.mxu0 %vm389_vm1, %v2460_v12  ;;  %2177 = vmatmul.mubr.msk.bf16.vlgmr.msra.gmra.mxu1 %vm389_vm1, %v2462_v13 }
  0x56   : > { %2181 = vmatpush3.bf16.msra.mxu0 %v2307_v0  ;;  %2187 = vmatpush3.bf16.msra.mxu1 %v2307_v0 }
  0x57   : > { %2182 = vmatprep.mubr.msk.bf16.mxu0 %vm2334_vm0, %v2333_v1  ;;  %2188 = vmatprep.mubr.msk.bf16.mxu1 %vm2334_vm0, %v2333_v1 }
  0x58   : > { %2192 = vmatprep.subr.bf16.mxu0 %v2333_v1  ;;  %2198 = vmatprep.subr.bf16.mxu1 %v2333_v1 }
  0x5d   : > { %2183 = vmatmul.mubr.msk.bf16.vlgmr.msra.gmra.mxu0 %vm389_vm1, %v2414_v28  ;;  %2189 = vmatmul.mubr.msk.bf16.vlgmr.msra.gmra.mxu1 %vm389_vm1, %v2416_v31  ;;  %v367_v28 = vunpack.c.l.bf16 %v365_v26 }
  0x5e   : > { %2193 = vmatpush3.bf16.msra.mxu0 %v2307_v0  ;;  %2199 = vmatpush3.bf16.msra.mxu1 %v2307_v0 }
  0x5f   : > { %2194 = vmatprep.mubr.msk.bf16.mxu0 %vm2334_vm0, %v2333_v1  ;;  %2200 = vmatprep.mubr.msk.bf16.mxu1 %vm2334_vm0, %v2333_v1  ;;  %v369_v30 = vmax.f32 %v367_v28, 0.0 }
  0x60   : > { %2204 = vmatprep.subr.bf16.mxu0 %v2333_v1  ;;  %2210 = vmatprep.subr.bf16.mxu1 %v2333_v1 }
  0x61   : > { %v370_v31 = vpack.c.bf16 %v369_v30, %v368_v29 }
  0x63   : > { %v1756_v33 = vshll.u32 %v370_v31, 16  ;;  %v1754_v34 = vshrl.u32 %v370_v31, 16 }
  0x65   : > { %2195 = vmatmul.mubr.msk.bf16.vlgmr.msra.gmra.mxu0 %vm389_vm1, %v2418_v32  ;;  %2201 = vmatmul.mubr.msk.bf16.vlgmr.msra.gmra.mxu1 %vm389_vm1, %v2433_v56  ;;  %v2308_v32 = vld [vmem:[%s2691_s2 + $0x18] sm:$0xff]   ;;  %v1758_v35 = vrot.slane %v1756_v33, 1 }
  0x66   : > { %2205 = vmatpush3.bf16.msra.mxu0 %v2307_v0  ;;  %2211 = vmatpush3.bf16.msra.mxu1 %v2307_v0 }
  0x67   : > { %2206 = vmatprep.mubr.msk.bf16.mxu0 %vm2334_vm0, %v2333_v1  ;;  %2212 = vmatprep.mubr.msk.bf16.mxu1 %vm2334_vm0, %v2333_v1  ;;  %v1759_v36 = vor.u32 %v1758_v35, %v1754_v34 }
  0x68   : > { %2216 = vmatprep.subr.bf16.mxu0 %v2333_v1  ;;  %2222 = vmatprep.subr.bf16.mxu1 %v2333_v1 }
  0x6d   : > { %2207 = vmatmul.mubr.msk.bf16.vlgmr.msra.gmra.mxu0 %vm389_vm1, %v2438_v58  ;;  %2213 = vmatmul.mubr.msk.bf16.vlgmr.msra.gmra.mxu1 %vm389_vm1, %v2460_v12 }
  0x6e   : > { %2217 = vmatpush3.bf16.msra.mxu0 %v2307_v0  ;;  %2223 = vmatpush3.bf16.msra.mxu1 %v2307_v0 }
  0x6f   : > { %2218 = vmatprep.mubr.msk.bf16.mxu0 %vm2334_vm0, %v2333_v1  ;;  %2224 = vmatprep.mubr.msk.bf16.mxu1 %vm2334_vm0, %v2333_v1 }
  0x70   : > { %2228 = vmatprep.subr.bf16.mxu0 %v2333_v1  ;;  %2234 = vmatprep.subr.bf16.mxu1 %v2333_v1 }
  0x75   : > { %2219 = vmatmul.mubr.msk.bf16.vlgmr.msra.gmra.mxu0 %vm389_vm1, %v2462_v13  ;;  %2225 = vmatmul.mubr.msk.bf16.vlgmr.msra.gmra.mxu1 %vm389_vm1, %v370_v31 }
  0x76   : > { %2229 = vmatpush3.bf16.msra.mxu0 %v2308_v32  ;;  %2235 = vmatpush3.bf16.msra.mxu1 %v2308_v32 }
  0x77   : > { %2230 = vmatprep.mubr.msk.bf16.mxu0 %vm2334_vm0, %v2333_v1  ;;  %2236 = vmatprep.mubr.msk.bf16.mxu1 %vm2334_vm0, %v2333_v1 }
  0x78   : > { %2240 = vmatprep.subr.bf16.mxu0 %v2333_v1  ;;  %2246 = vmatprep.subr.bf16.mxu1 %v2333_v1 }
  0x7d   : > { %2231 = vmatmul.mubr.msk.bf16.vlgmr.msra.gmra.mxu0 %vm389_vm1, %v2428_v50  ;;  %2237 = vmatmul.mubr.msk.bf16.vlgmr.msra.gmra.mxu1 %vm389_vm1, %v2447_v62 }
  0x7e   : > { %2241 = vmatpush3.bf16.msra.mxu0 %v2308_v32  ;;  %2247 = vmatpush3.bf16.msra.mxu1 %v2308_v32 }
  0x7f   : > { %2242 = vmatprep.mubr.msk.bf16.mxu0 %vm2334_vm0, %v2333_v1  ;;  %2248 = vmatprep.mubr.msk.bf16.mxu1 %vm2334_vm0, %v2333_v1 }
  0x80   : > { %2252 = vmatprep.subr.bf16.mxu0 %v2333_v1  ;;  %2258 = vmatprep.subr.bf16.mxu1 %v2333_v1 }
  0x85   : > { %2243 = vmatmul.mubr.msk.bf16.vlgmr.msra.gmra.mxu0 %vm389_vm1, %v2449_v63  ;;  %2249 = vmatmul.mubr.msk.bf16.vlgmr.msra.gmra.mxu1 %vm389_vm1, %v2472_v14 }
  0x86   : > { %2253 = vmatpush3.bf16.msra.mxu0 %v2308_v32  ;;  %2259 = vmatpush3.bf16.msra.mxu1 %v2308_v32 }
  0x87   : > { %2254 = vmatprep.mubr.msk.bf16.mxu0 %vm2334_vm0, %v2333_v1  ;;  %2260 = vmatprep.mubr.msk.bf16.mxu1 %vm2334_vm0, %v2333_v1 }
  0x88   : > { %2264 = vmatprep.subr.bf16.mxu0 %v2333_v1  ;;  %2270 = vmatprep.subr.bf16.mxu1 %v2333_v1 }
  0x8d   : > { %2255 = vmatmul.mubr.msk.bf16.vlgmr.msra.gmra.mxu0 %vm389_vm1, %v2474_v15  ;;  %2261 = vmatmul.mubr.msk.bf16.vlgmr.msra.gmra.mxu1 %vm389_vm1, %v2492_v22 }
  0x8e   : > { %2265 = vmatpush3.bf16.msra.mxu0 %v2308_v32  ;;  %2271 = vmatpush3.bf16.msra.mxu1 %v2308_v32 }
  0x8f   : > { %2266 = vmatprep.mubr.msk.bf16.mxu0 %vm2334_vm0, %v2333_v1  ;;  %2272 = vmatprep.mubr.msk.bf16.mxu1 %vm2334_vm0, %v2333_v1 }
  0x95   : > { %2267 = vmatmul.mubr.msk.bf16.vlgmr.msra.gmra.mxu0 %vm389_vm1, %v2494_v23  ;;  %2273 = vmatmul.mubr.msk.bf16.vlgmr.msra.gmra.mxu1 %vm389_vm1, %v1759_v36 }
  0xdd   : > { %v427_v37 = vpop.f32.mrf.mxu0  ;;  %v477_v38 = vpop.f32.mrf.mxu1 }
  0xdf   : > { %v2088_v39 = vpop.f32.mrf.mxu0  ;;  %v2094_v40 = vpop.f32.mrf.mxu1 }
  0xe1   : > { %v430_v41 = vpop.f32.mrf.mxu0  ;;  %v480_v42 = vpop.f32.mrf.mxu1 }
  0xe3   : > { %v2089_v43 = vpop.f32.mrf.mxu0  ;;  %v2095_v44 = vpop.f32.mrf.mxu1 }
  0xe5   : > { %v527_v45 = vpop.f32.mrf.mxu0  ;;  %v577_v46 = vpop.f32.mrf.mxu1 }
  0xe7   : > { %v2100_v47 = vpop.f32.mrf.mxu0  ;;  %v2106_v48 = vpop.f32.mrf.mxu1 }
  0xe9   : > { %v530_v49 = vpop.f32.mrf.mxu0  ;;  %v580_v50 = vpop.f32.mrf.mxu1 }
  0xeb   : > { %v2101_v51 = vpop.f32.mrf.mxu0  ;;  %v2107_v52 = vpop.f32.mrf.mxu1 }
  0xed   : > { %v627_v53 = vpop.f32.mrf.mxu0  ;;  %v677_v54 = vpop.f32.mrf.mxu1 }
  0xef   : > { %v2112_v55 = vpop.f32.mrf.mxu0  ;;  %v2118_v1 = vpop.f32.mrf.mxu1 }
  0xf1   : > { %v630_v56 = vpop.f32.mrf.mxu0  ;;  %v680_v57 = vpop.f32.mrf.mxu1 }
  0xf3   : > { %v2113_v58 = vpop.f32.mrf.mxu0  ;;  %v2119_v59 = vpop.f32.mrf.mxu1 }
  0xf5   : > { %v2646_v60 = vpop.f32.mrf.mxu0  ;;  %v2648_v61 = vpop.f32.mrf.mxu1 }
  0xf7   : > { %v2124_v62 = vpop.f32.mrf.mxu0  ;;  %v2130_v63 = vpop.f32.mrf.mxu1 }
  0xf9   : > { %v730_v2 = vpop.f32.mrf.mxu0  ;;  %v780_v3 = vpop.f32.mrf.mxu1 }
  0xfb   : > { %v2125_v4 = vpop.f32.mrf.mxu0  ;;  %v2131_v5 = vpop.f32.mrf.mxu1 }
  0xfd   : > { %v825_v6 = vpop.f32.mrf.mxu0  ;;  %v867_v7 = vpop.f32.mrf.mxu1 }
  0xfe   : > { %v2650_v8 = vadd.f32 %v825_v6, %v427_v37  ;;  %v2652_v9 = vadd.f32 %v867_v7, %v477_v38 }
  0xff   : > { %v2136_v10 = vpop.f32.mrf.mxu0  ;;  %v2142_v11 = vpop.f32.mrf.mxu1 }
 0x101   : > { %v828_v12 = vpop.f32.mrf.mxu0  ;;  %v870_v13 = vpop.f32.mrf.mxu1 }
 0x103   : > { %v2137_v14 = vpop.f32.mrf.mxu0  ;;  %v2143_v15 = vpop.f32.mrf.mxu1 }
 0x105   : > { %v909_v16 = vpop.f32.mrf.mxu0  ;;  %v951_v17 = vpop.f32.mrf.mxu1 }
 0x106   : > { %v2654_v18 = vadd.f32 %v909_v16, %v527_v45  ;;  %v2656_v19 = vadd.f32 %v951_v17, %v577_v46 }
 0x107   : > { %v2148_v20 = vpop.f32.mrf.mxu0  ;;  %v2154_v21 = vpop.f32.mrf.mxu1 }
 0x109   : > { %v912_v22 = vpop.f32.mrf.mxu0  ;;  %v954_v23 = vpop.f32.mrf.mxu1 }
 0x10b   : > { %v2149_v24 = vpop.f32.mrf.mxu0  ;;  %v2155_v0 = vpop.f32.mrf.mxu1 }
 0x10d   : > { %v993_v25 = vpop.f32.mrf.mxu0  ;;  %v1035_v26 = vpop.f32.mrf.mxu1 }
 0x10e   : > { %v2658_v27 = vadd.f32 %v993_v25, %v627_v53  ;;  %v2660_v28 = vadd.f32 %v1035_v26, %v677_v54 }
 0x10f   : > { %v2160_v29 = vpop.f32.mrf.mxu0  ;;  %v2166_v30 = vpop.f32.mrf.mxu1 }
 0x111   : > { %v996_v31 = vpop.f32.mrf.mxu0  ;;  %v1038_v32 = vpop.f32.mrf.mxu1 }
 0x113   : > { %v2161_v33 = vpop.f32.mrf.mxu0  ;;  %v2167_v34 = vpop.f32.mrf.mxu1 }
 0x115   : > { %v2662_v35 = vpop.f32.mrf.mxu0  ;;  %v2664_v36 = vpop.f32.mrf.mxu1 }
 0x117   : > { %v2172_v37 = vpop.f32.mrf.mxu0  ;;  %v2178_v38 = vpop.f32.mrf.mxu1 }
 0x119   : > { %v1080_v39 = vpop.f32.mrf.mxu0  ;;  %v1122_v40 = vpop.f32.mrf.mxu1 }
 0x11b   : > { %v2173_v41 = vpop.f32.mrf.mxu0  ;;  %v2179_v42 = vpop.f32.mrf.mxu1 }
 0x11d   : > { %v1168_v43 = vpop.f32.mrf.mxu0  ;;  %v1208_v44 = vpop.f32.mrf.mxu1 }
 0x11e   : > { %v1457_v16 = vadd.f32 %v1168_v43, %v2650_v8  ;;  %v1458_v17 = vadd.f32 %v1208_v44, %v2652_v9 }
 0x11f   : > { %v2184_v45 = vpop.f32.mrf.mxu0  ;;  %v2190_v46 = vpop.f32.mrf.mxu1 }
 0x121   : > { %v1171_v47 = vpop.f32.mrf.mxu0  ;;  %v1211_v48 = vpop.f32.mrf.mxu1 }
 0x123   : > { %v2185_v49 = vpop.f32.mrf.mxu0  ;;  %v2191_v50 = vpop.f32.mrf.mxu1 }
 0x125   : > { %v1248_v51 = vpop.f32.mrf.mxu0  ;;  %v1288_v52 = vpop.f32.mrf.mxu1 }
 0x126   : > { %v1459_v37 = vadd.f32 %v1248_v51, %v2654_v18  ;;  %v1460_v8 = vadd.f32 %v1288_v52, %v2656_v19 }
 0x127   : > { %v2196_v53 = vpop.f32.mrf.mxu0  ;;  %v2202_v54 = vpop.f32.mrf.mxu1 }
 0x129   : > { %v1251_v55 = vpop.f32.mrf.mxu0  ;;  %v1291_v1 = vpop.f32.mrf.mxu1 }
 0x12b   : > { %v2197_v56 = vpop.f32.mrf.mxu0  ;;  %v2203_v57 = vpop.f32.mrf.mxu1 }
 0x12d   : > { %v1328_v58 = vpop.f32.mrf.mxu0  ;;  %v1368_v59 = vpop.f32.mrf.mxu1 }
 0x12e   : > { %v1461_v54 = vadd.f32 %v1328_v58, %v2658_v27  ;;  %v1462_v18 = vadd.f32 %v1368_v59, %v2660_v28 }
 0x12f   : > { %v2208_v62 = vpop.f32.mrf.mxu0  ;;  %v2214_v63 = vpop.f32.mrf.mxu1 }
 0x131   : > { %v1331_v2 = vpop.f32.mrf.mxu0  ;;  %v1371_v3 = vpop.f32.mrf.mxu1 }
 0x132   : > { %v1078_v2 = vadd.f32 %v2662_v35, %v2646_v60 }
 0x133   : > { %v2209_v4 = vpop.f32.mrf.mxu0  ;;  %v2215_v5 = vpop.f32.mrf.mxu1 }
 0x134   : > { %v1120_v5 = vadd.f32 %v2664_v36, %v2648_v61 }
 0x135   : > { %v1408_v6 = vpop.f32.mrf.mxu0  ;;  %v1451_v7 = vpop.f32.mrf.mxu1 }
 0x137   : > { %v2220_v10 = vpop.f32.mrf.mxu0  ;;  %v2226_v11 = vpop.f32.mrf.mxu1 }
 0x138   : > { %v1463_v11 = vadd.f32 %v1408_v6, %v1078_v2 }
 0x139   : > { %v1411_v12 = vpop.f32.mrf.mxu0  ;;  %v1454_v13 = vpop.f32.mrf.mxu1 }
 0x13a   : > { %v1464_v12 = vadd.f32 %v1451_v7, %v1120_v5 }
 0x13b   : > { %v2221_v14 = vpop.f32.mrf.mxu0  ;;  %v2227_v15 = vpop.f32.mrf.mxu1 }
 0x13d   : > { %v1508_v20 = vpop.f32.mrf.mxu0  ;;  %v1548_v21 = vpop.f32.mrf.mxu1 }
 0x13e   : > { %v1803_v22 = vadd.f32 %v1508_v20, %v1457_v16  ;;  %v1804_v23 = vadd.f32 %v1548_v21, %v1458_v17 }
 0x13f   : > { %v2232_v24 = vpop.f32.mrf.mxu0  ;;  %v2238_v0 = vpop.f32.mrf.mxu1 }
 0x140   : > { %v1824_v25 = vmul.f32 %v1803_v22, %v1803_v22  ;;  %v1811_v26 = vadd.f32 %v1804_v23, %v1803_v22  ;;  %v1825_v29 = vmul.f32 %v1804_v23, %v1804_v23 }
 0x141   : > { %v1511_v30 = vpop.f32.mrf.mxu0  ;;  %v1551_v31 = vpop.f32.mrf.mxu1 }
 0x142   : > { %v1832_v32 = vadd.f32 %v1825_v29, %v1824_v25 }
 0x143   : > { %v2233_v33 = vpop.f32.mrf.mxu0  ;;  %v2239_v34 = vpop.f32.mrf.mxu1 }
 0x145   : > { %v1588_v38 = vpop.f32.mrf.mxu0  ;;  %v1628_v9 = vpop.f32.mrf.mxu1 }
 0x146   : > { %v1805_v39 = vadd.f32 %v1588_v38, %v1459_v37  ;;  %v1806_v40 = vadd.f32 %v1628_v9, %v1460_v8  ;;  %v1851_v8 = vld [vmem:[%s2634_s11] sm:$0x1] }
 0x147   : > { %v2244_v41 = vpop.f32.mrf.mxu0  ;;  %v2250_v42 = vpop.f32.mrf.mxu1 }
 0x148   : > { %v1812_v43 = vadd.f32 %v1811_v26, %v1805_v39  ;;  %v1826_v44 = vmul.f32 %v1805_v39, %v1805_v39  ;;  %v1827_v49 = vmul.f32 %v1806_v40, %v1806_v40  ;;  %v1854_v39 = vld [vmem:[%s2640_s14] sm:$0x1] }
 0x149   : > { %v1591_v45 = vpop.f32.mrf.mxu0  ;;  %v1631_v46 = vpop.f32.mrf.mxu1 }
 0x14a   : > { %v1833_v47 = vadd.f32 %v1832_v32, %v1826_v44  ;;  %v1813_v48 = vadd.f32 %v1812_v43, %v1806_v40 }
 0x14b   : > { %v2245_v50 = vpop.f32.mrf.mxu0  ;;  %v2251_v53 = vpop.f32.mrf.mxu1 }
 0x14c   : > { %v1834_v19 = vadd.f32 %v1833_v47, %v1827_v49 }
 0x14d   : > { %v1668_v51 = vpop.f32.mrf.mxu0  ;;  %v1708_v52 = vpop.f32.mrf.mxu1 }
 0x14e   : > { %v1807_v55 = vadd.f32 %v1668_v51, %v1461_v54  ;;  %v1808_v1 = vadd.f32 %v1708_v52, %v1462_v18 }
 0x14f   : > { %v2256_v56 = vpop.f32.mrf.mxu0  ;;  %v2262_v57 = vpop.f32.mrf.mxu1 }
 0x150   : > { %v1814_v62 = vadd.f32 %v1813_v48, %v1807_v55  ;;  %v1828_v63 = vmul.f32 %v1807_v55, %v1807_v55  ;;  %v1829_v28 = vmul.f32 %v1808_v1, %v1808_v1 }
 0x151   : > { %v1671_v3 = vpop.f32.mrf.mxu0  ;;  %v1711_v4 = vpop.f32.mrf.mxu1 }
 0x152   : > { %v1835_v27 = vadd.f32 %v1834_v19, %v1828_v63  ;;  %v1815_v58 = vadd.f32 %v1814_v62, %v1808_v1 }
 0x153   : > { %v2257_v59 = vpop.f32.mrf.mxu0  ;;  %v2263_v10 = vpop.f32.mrf.mxu1 }
 0x154   : > { %v1836_v13 = vadd.f32 %v1835_v27, %v1829_v28 }
 0x155   : > { %v1748_v14 = vpop.f32.mrf.mxu0  ;;  %v1797_v15 = vpop.f32.mrf.mxu1 }
 0x156   : > { %v1809_v16 = vadd.f32 %v1748_v14, %v1463_v11  ;;  %v1810_v17 = vadd.f32 %v1797_v15, %v1464_v12 }
 0x157   : > { %v2268_v20 = vpop.f32.mrf.mxu0  ;;  %v2274_v21 = vpop.f32.mrf.mxu1 }
 0x158   : > { %v1816_v60 = vadd.f32 %v1815_v58, %v1809_v16  ;;  %v1830_v35 = vmul.f32 %v1809_v16, %v1809_v16  ;;  %v1831_v24 = vmul.f32 %v1810_v17, %v1810_v17 }
 0x159   : > { %v1751_v22 = vpop.f32.mrf.mxu0  ;;  %v1800_v23 = vpop.f32.mrf.mxu1 }
 0x15a   : > { %v1837_v61 = vadd.f32 %v1836_v13, %v1830_v35  ;;  %v1817_v36 = vadd.f32 %v1816_v60, %v1810_v17 }
 0x15b   : > { %v2269_v0 = vpop.f32.mrf.mxu0  ;;  %v2275_v25 = vpop.f32.mrf.mxu1 }
 0x15c   : > { %v1818_v6 = vrot.slane %v1817_v36, 4  ;;  %v1838_v7 = vadd.f32 %v1837_v61, %v1831_v24 }
 0x15e   : > { %v1819_v26 = vadd.f32 %v1818_v6, %v1817_v36  ;;  %v1839_v29 = vrot.slane %v1838_v7, 4 }
 0x160   : > { %v1820_v30 = vrot.slane %v1819_v26, 2  ;;  %v1840_v31 = vadd.f32 %v1839_v29, %v1838_v7 }
 0x162   : > { %v1821_v32 = vadd.f32 %v1820_v30, %v1819_v26  ;;  %v1841_v33 = vrot.slane %v1840_v31, 2 }
 0x164   : > { %v1822_v34 = vrot.slane %v1821_v32, 1  ;;  %v1842_v37 = vadd.f32 %v1841_v33, %v1840_v31 }
 0x166   : > { %v1823_v38 = vadd.f32 %v1822_v34, %v1821_v32  ;;  %v1843_v9 = vrot.slane %v1842_v37, 1 }
 0x168   : > { %v1844_v40 = vadd.f32 %v1843_v9, %v1842_v37  ;;  %v1852_v41 = vadd.f32 %v1851_v8, %v1823_v38 }
 0x16a   : > { %1853 = vst [vmem:[%s2634_s11] sm:$0x1] %v1852_v41  ;;  %v1855_v42 = vadd.f32 %v1854_v39, %v1844_v40 }
 0x16c   : > { %1856 = vst [vmem:[%s2640_s14] sm:$0x1] %v1855_v42 }
 0x16d PF: > { %s15_s17 = sadd.s32 1, %s2331_s17   ;;  %s2694_s15 = smov %s2327_s16 }
 0x16e   : > { %p12_p5 = scmp.ge.s32.totalorder %s15_s17, 4   ;;  %s2695_s16 = smov %s2697_s18 }
 0x170   :  { %14 = sbr.rel (!%p12_p5) target bundleno = 2 (0x2), region = 84 }

// kernel: stem1_imagenet_forward.3
= control target key start
LH: loop header
LB: loop body
LE: loop exit
PB: predicated region body
PF: predicated region fallthrough
CT: control target
= control target key end

     0   :  { %s2396_s18 = smov 0   ;;  %s2398_s19 = smov 0   ;;  %s2763_s0 = inlined_call_operand.vmem [shape: bf16[2,9,9,16], index: 0, kind: input, shape index: {}, may-alias: {0,1}]   ;;  %s2764_s1 = inlined_call_operand.vmem [shape: bf16[2,9,9,16], index: 1, kind: input, shape index: {}, may-alias: {0,1}]   ;;  %s2765_s2 = inlined_call_operand.vmem [shape: bf16[4,16,128], index: 2, kind: input, shape index: {}]   ;;  %s2766_s3 = inlined_call_operand.vmem [shape: f32[1,128], index: 3, kind: input, shape index: {}]   ;;  %s2767_s4 = inlined_call_operand.vmem [shape: f32[1,128], index: 4, kind: input, shape index: {}]   ;;  %s2768_s5 = inlined_call_operand.vmem [shape: f32[2,8,8,128], index: 5, kind: output, shape index: {}]  }
   0x1   :  { %s2400_s20 = smov 0  }
   0x2 LB: > { %s27_s21 = sadd.s32 1, %s2358_s19  ;;  %p1997_p0 = scmp.ge.s32.totalorder %s2362_s20, 1  ;;  %s2362_s20 = sphi %s2400_s20, %s15_s20   ;;  %s2358_s19 = sphi %s2398_s19, %s2770_s19   ;;  %s2354_s18 = sphi %s2396_s18, %s2769_s18  }
   0x3   : > { %p29_p1 = scmp.ge.s32.totalorder %s27_s21, 2  ;;  %p243_p2 = scmp.lt.s32.totalorder %s2362_s20, 3 }
   0x5   : > { %s2772_s21 = smov (%p29_p1, %s27_s21), 0  ;;  %p244_p3 = pnand %p1997_p0, %p243_p2 }
   0x6   : > { %p302_p4 = scmp.lt.s32.totalorder (!%p244_p3), %s2354_s18, 1 }
   0x7   : > { %247 = sbr.rel (%p244_p3) target bundleno = 349 (0x15d), region = 40 }
   0xc   : > { %v2417_v0 = vld [vmem:[%s2765_s2 + $0x8] sm:$0xff]   ;;  %v2364_v1 = vmov 0.0   ;;  %vm2365_vm0 = vmmov 0   ;;  %s2774_s18 = smov (!%p302_p4, %s2354_s18), 1  ;;  %vm422_vm1 = vcmask 130048  }
   0xd   : > { %2115 = vmatprep.subr.bf16.mxu0 %v2364_v1  ;;  %2121 = vmatprep.subr.bf16.mxu1 %v2364_v1  ;;  %s2307_s24 = smul.u32 72, %s2774_s18  ;;  %s2050_s15 = sshll.u32 %s2774_s18, 6 }
   0xe   : > { %2116 = vmatpush3.bf16.msra.mxu0 %v2417_v0  ;;  %2122 = vmatpush3.bf16.msra.mxu1 %v2417_v0 }
   0xf   : > { %2117 = vmatprep.mubr.msk.bf16.mxu0 %vm2365_vm0, %v2364_v1  ;;  %2123 = vmatprep.mubr.msk.bf16.mxu1 %vm2365_vm0, %v2364_v1  ;;  %s2437_s27 = scalar_lea.vmem %s2763_s0, %s2307_s24  ;;  %s2049_s7 = sadd.s32 64, %s2307_s24 }
  0x10   : > { %2127 = vmatprep.subr.bf16.mxu0 %v2364_v1  ;;  %2133 = vmatprep.subr.bf16.mxu1 %v2364_v1  ;;  %v341_v2 = vld [vmem:[%s2437_s27] ss:$8 sps:$4 sm:$0xff]   ;;  %v342_v3 = vld [vmem:[%s2437_s27 + $0x4] sm:$0x1]  ;;  %v344_v4 = vld [vmem:[%s2437_s27 + $0xc] sm:$0x1]  ;;  %s327_s10 = scalar_lea.vmem %s2764_s1, %s2049_s7  ;;  %s2716_s24 = scalar_lea.vmem %s2768_s5, %s2050_s15 }
  0x11   : > { %v357_v5 = vunpack.c.l.bf16 %v341_v2  ;;  %v358_v6 = vunpack.c.l.bf16 %v342_v3  ;;  %v359_v7 = vunpack.c.h.bf16 %v341_v2  ;;  %v360_v8 = vunpack.c.l.bf16 %v344_v4  ;;  %v345_v9 = vld [vmem:[%s2437_s27 + $0x10] ss:$8 sps:$4 sm:$0xff]   ;;  %v346_v10 = vld [vmem:[%s2437_s27 + $0x14] sm:$0x1]  ;;  %v348_v11 = vld [vmem:[%s2437_s27 + $0x1c] sm:$0x1] }
  0x12   : > { %v361_v12 = vunpack.c.l.bf16 %v345_v9  ;;  %v362_v13 = vunpack.c.l.bf16 %v346_v10  ;;  %v363_v14 = vunpack.c.h.bf16 %v345_v9  ;;  %v364_v15 = vunpack.c.l.bf16 %v348_v11  ;;  %v349_v16 = vld [vmem:[%s2437_s27 + $0x20] ss:$8 sps:$4 sm:$0xff]   ;;  %v350_v17 = vld [vmem:[%s2437_s27 + $0x24] sm:$0x1]  ;;  %v352_v22 = vld [vmem:[%s2437_s27 + $0x2c] sm:$0x1] }
  0x13   : > { %v373_v18 = vmax.f32 %v357_v5, 0.0  ;;  %v374_v19 = vmax.f32 %v358_v6, 0.0  ;;  %v375_v20 = vmax.f32 %v359_v7, 0.0  ;;  %v376_v21 = vmax.f32 %v360_v8, 0.0  ;;  %v353_v45 = vld [vmem:[%s2437_s27 + $0x30] ss:$8 sps:$4 sm:$0xff]  }
  0x14   : > { %v377_v23 = vmax.f32 %v361_v12, 0.0  ;;  %v378_v24 = vmax.f32 %v362_v13, 0.0  ;;  %v379_v25 = vmax.f32 %v363_v14, 0.0  ;;  %v380_v26 = vmax.f32 %v364_v15, 0.0  ;;  %v354_v48 = vld [vmem:[%s2437_s27 + $0x34] sm:$0x1] }
  0x15   : > { %v2448_v27 = vpack.c.bf16 %v374_v19, %v373_v18  ;;  %v2450_v28 = vpack.c.bf16 %v376_v21, %v375_v20  ;;  %v365_v29 = vunpack.c.l.bf16 %v349_v16  ;;  %v366_v30 = vunpack.c.l.bf16 %v350_v17  ;;  %v356_v53 = vld [vmem:[%s2437_s27 + $0x3c] sm:$0x1] }
  0x16   : > { %v2452_v31 = vpack.c.bf16 %v378_v24, %v377_v23  ;;  %v2454_v32 = vpack.c.bf16 %v380_v26, %v379_v25  ;;  %v367_v33 = vunpack.c.h.bf16 %v349_v16  ;;  %v368_v34 = vunpack.c.l.bf16 %v352_v22  ;;  %v2337_v24 = vld [vmem:[%s2765_s2] sm:$0xff]  }
  0x17   : > { %v410_v35 = vshrl.u32 %v2448_v27, 16  ;;  %v412_v36 = vshll.u32 %v2448_v27, 16  ;;  %v467_v37 = vshrl.u32 %v2450_v28, 16  ;;  %v469_v38 = vshll.u32 %v2450_v28, 16  ;;  %v397_v25 = vld [vmem:[%s327_s10] sm:$0xf] }
  0x18   : > { %v519_v39 = vshll.u32 %v2452_v31, 16  ;;  %v569_v40 = vshll.u32 %v2454_v32, 16  ;;  %v381_v43 = vmax.f32 %v365_v29, 0.0  ;;  %v382_v44 = vmax.f32 %v366_v30, 0.0  ;;  %v398_v26 = vld [vmem:[%s327_s10 + $0x4] sm:$0x1] }
  0x19   : > { %v414_v41 = vrot.slane %v412_v36, 1  ;;  %v471_v42 = vrot.slane %v469_v38, 1  ;;  %v383_v46 = vmax.f32 %v367_v33, 0.0  ;;  %v384_v47 = vmax.f32 %v368_v34, 0.0 }
  0x1a   : > { %v517_v51 = vshrl.u32 %v2452_v31, 16  ;;  %v567_v52 = vshrl.u32 %v2454_v32, 16  ;;  %v521_v54 = vrot.slane %v519_v39, 1  ;;  %v571_v55 = vrot.slane %v569_v40, 1 }
  0x1b   : > { %v415_v49 = vor.u32 %v414_v41, %v410_v35  ;;  %v2464_v50 = vor.u32 %v471_v42, %v467_v37  ;;  %v2469_v56 = vpack.c.bf16 %v382_v44, %v381_v43  ;;  %v369_v57 = vunpack.c.l.bf16 %v353_v45 }
  0x1c   : > { %v2474_v58 = vpack.c.bf16 %v384_v47, %v383_v46  ;;  %v370_v59 = vunpack.c.l.bf16 %v354_v48  ;;  %v371_v60 = vunpack.c.h.bf16 %v353_v45  ;;  %v372_v61 = vunpack.c.l.bf16 %v356_v53 }
  0x1d   : > { %2118 = vmatmul.mubr.msk.bf16.vlgmr.msra.gmra.mxu0 %vm422_vm1, %v415_v49  ;;  %2124 = vmatmul.mubr.msk.bf16.vlgmr.msra.gmra.mxu1 %vm422_vm1, %v2464_v50  ;;  %v2484_v62 = vor.u32 %v521_v54, %v517_v51  ;;  %v2486_v63 = vor.u32 %v571_v55, %v567_v52  ;;  %v619_v2 = vshll.u32 %v2469_v56, 16  ;;  %v385_v3 = vmax.f32 %v369_v57, 0.0 }
  0x1e   : > { %2128 = vmatpush3.bf16.msra.mxu0 %v2417_v0  ;;  %2134 = vmatpush3.bf16.msra.mxu1 %v2417_v0  ;;  %v669_v4 = vshll.u32 %v2474_v58, 16  ;;  %v386_v5 = vmax.f32 %v370_v59, 0.0  ;;  %v387_v6 = vmax.f32 %v371_v60, 0.0  ;;  %v388_v7 = vmax.f32 %v372_v61, 0.0 }
  0x1f   : > { %2129 = vmatprep.mubr.msk.bf16.mxu0 %vm2365_vm0, %v2364_v1  ;;  %2135 = vmatprep.mubr.msk.bf16.mxu1 %vm2365_vm0, %v2364_v1  ;;  %v617_v8 = vshrl.u32 %v2469_v56, 16  ;;  %v667_v9 = vshrl.u32 %v2474_v58, 16  ;;  %v621_v10 = vrot.slane %v619_v2, 1 }
  0x20   : > { %2139 = vmatprep.subr.bf16.mxu0 %v2364_v1  ;;  %2145 = vmatprep.subr.bf16.mxu1 %v2364_v1  ;;  %v671_v11 = vrot.slane %v669_v4, 1  ;;  %v2496_v12 = vpack.c.bf16 %v386_v5, %v385_v3  ;;  %v2498_v13 = vpack.c.bf16 %v388_v7, %v387_v6 }
  0x21   : > { %v2508_v14 = vor.u32 %v621_v10, %v617_v8 }
  0x22   : > { %v2510_v15 = vor.u32 %v671_v11, %v667_v9  ;;  %v719_v16 = vshll.u32 %v2496_v12, 16  ;;  %v769_v17 = vshll.u32 %v2498_v13, 16  ;;  %v717_v18 = vshrl.u32 %v2496_v12, 16 }
  0x23   : > { %v767_v20 = vshrl.u32 %v2498_v13, 16 }
  0x24   : > { %v721_v19 = vrot.slane %v719_v16, 1  ;;  %v771_v21 = vrot.slane %v769_v17, 1 }
  0x25   : > { %2130 = vmatmul.mubr.msk.bf16.vlgmr.msra.gmra.mxu0 %vm422_vm1, %v2484_v62  ;;  %2136 = vmatmul.mubr.msk.bf16.vlgmr.msra.gmra.mxu1 %vm422_vm1, %v2486_v63 }
  0x26   : > { %2140 = vmatpush3.bf16.msra.mxu0 %v2417_v0  ;;  %2146 = vmatpush3.bf16.msra.mxu1 %v2417_v0  ;;  %v2528_v22 = vor.u32 %v721_v19, %v717_v18  ;;  %v2530_v23 = vor.u32 %v771_v21, %v767_v20 }
  0x27   : > { %2141 = vmatprep.mubr.msk.bf16.mxu0 %vm2365_vm0, %v2364_v1  ;;  %2147 = vmatprep.mubr.msk.bf16.mxu1 %vm2365_vm0, %v2364_v1 }
  0x28   : > { %2151 = vmatprep.subr.bf16.mxu0 %v2364_v1  ;;  %2157 = vmatprep.subr.bf16.mxu1 %v2364_v1 }
  0x2d   : > { %2142 = vmatmul.mubr.msk.bf16.vlgmr.msra.gmra.mxu0 %vm422_vm1, %v2508_v14  ;;  %2148 = vmatmul.mubr.msk.bf16.vlgmr.msra.gmra.mxu1 %vm422_vm1, %v2510_v15 }
  0x2e   : > { %2152 = vmatpush3.bf16.msra.mxu0 %v2417_v0  ;;  %2158 = vmatpush3.bf16.msra.mxu1 %v2417_v0  ;;  %v2338_v0 = vld [vmem:[%s2765_s2 + $0x10] sm:$0xff]  }
  0x2f   : > { %2153 = vmatprep.mubr.msk.bf16.mxu0 %vm2365_vm0, %v2364_v1  ;;  %2159 = vmatprep.mubr.msk.bf16.mxu1 %vm2365_vm0, %v2364_v1 }
  0x30   : > { %2163 = vmatprep.subr.bf16.mxu0 %v2364_v1  ;;  %2169 = vmatprep.subr.bf16.mxu1 %v2364_v1 }
  0x35   : > { %2154 = vmatmul.mubr.msk.bf16.vlgmr.msra.gmra.mxu0 %vm422_vm1, %v2528_v22  ;;  %2160 = vmatmul.mubr.msk.bf16.vlgmr.msra.gmra.mxu1 %vm422_vm1, %v2530_v23 }
  0x36   : > { %2164 = vmatpush3.bf16.msra.mxu0 %v2337_v24  ;;  %2170 = vmatpush3.bf16.msra.mxu1 %v2337_v24 }
  0x37   : > { %2165 = vmatprep.mubr.msk.bf16.mxu0 %vm2365_vm0, %v2364_v1  ;;  %2171 = vmatprep.mubr.msk.bf16.mxu1 %vm2365_vm0, %v2364_v1 }
  0x38   : > { %2175 = vmatprep.subr.bf16.mxu0 %v2364_v1  ;;  %2181 = vmatprep.subr.bf16.mxu1 %v2364_v1 }
  0x3d   : > { %2166 = vmatmul.mubr.msk.bf16.vlgmr.msra.gmra.mxu0 %vm422_vm1, %v2448_v27  ;;  %2172 = vmatmul.mubr.msk.bf16.vlgmr.msra.gmra.mxu1 %vm422_vm1, %v2450_v28  ;;  %v399_v27 = vunpack.c.l.bf16 %v397_v25 }
  0x3e   : > { %2176 = vmatpush3.bf16.msra.mxu0 %v2337_v24  ;;  %2182 = vmatpush3.bf16.msra.mxu1 %v2337_v24 }
  0x3f   : > { %2177 = vmatprep.mubr.msk.bf16.mxu0 %vm2365_vm0, %v2364_v1  ;;  %2183 = vmatprep.mubr.msk.bf16.mxu1 %vm2365_vm0, %v2364_v1  ;;  %v401_v29 = vmax.f32 %v399_v27, 0.0 }
  0x40   : > { %2187 = vmatprep.subr.bf16.mxu0 %v2364_v1  ;;  %2193 = vmatprep.subr.bf16.mxu1 %v2364_v1 }
  0x45   : > { %2178 = vmatmul.mubr.msk.bf16.vlgmr.msra.gmra.mxu0 %vm422_vm1, %v2452_v31  ;;  %2184 = vmatmul.mubr.msk.bf16.vlgmr.msra.gmra.mxu1 %vm422_vm1, %v2454_v32 }
  0x46   : > { %2188 = vmatpush3.bf16.msra.mxu0 %v2337_v24  ;;  %2194 = vmatpush3.bf16.msra.mxu1 %v2337_v24 }
  0x47   : > { %2189 = vmatprep.mubr.msk.bf16.mxu0 %vm2365_vm0, %v2364_v1  ;;  %2195 = vmatprep.mubr.msk.bf16.mxu1 %vm2365_vm0, %v2364_v1 }
  0x48   : > { %2199 = vmatprep.subr.bf16.mxu0 %v2364_v1  ;;  %2205 = vmatprep.subr.bf16.mxu1 %v2364_v1 }
  0x4d   : > { %2190 = vmatmul.mubr.msk.bf16.vlgmr.msra.gmra.mxu0 %vm422_vm1, %v2469_v56  ;;  %2196 = vmatmul.mubr.msk.bf16.vlgmr.msra.gmra.mxu1 %vm422_vm1, %v2474_v58 }
  0x4e   : > { %2200 = vmatpush3.bf16.msra.mxu0 %v2337_v24  ;;  %2206 = vmatpush3.bf16.msra.mxu1 %v2337_v24 }
  0x4f   : > { %2201 = vmatprep.mubr.msk.bf16.mxu0 %vm2365_vm0, %v2364_v1  ;;  %2207 = vmatprep.mubr.msk.bf16.mxu1 %vm2365_vm0, %v2364_v1 }
  0x50   : > { %2211 = vmatprep.subr.bf16.mxu0 %v2364_v1  ;;  %2217 = vmatprep.subr.bf16.mxu1 %v2364_v1 }
  0x55   : > { %2202 = vmatmul.mubr.msk.bf16.vlgmr.msra.gmra.mxu0 %vm422_vm1, %v2496_v12  ;;  %2208 = vmatmul.mubr.msk.bf16.vlgmr.msra.gmra.mxu1 %vm422_vm1, %v2498_v13 }
  0x56   : > { %2212 = vmatpush3.bf16.msra.mxu0 %v2338_v0  ;;  %2218 = vmatpush3.bf16.msra.mxu1 %v2338_v0 }
  0x57   : > { %2213 = vmatprep.mubr.msk.bf16.mxu0 %vm2365_vm0, %v2364_v1  ;;  %2219 = vmatprep.mubr.msk.bf16.mxu1 %vm2365_vm0, %v2364_v1 }
  0x58   : > { %2223 = vmatprep.subr.bf16.mxu0 %v2364_v1  ;;  %2229 = vmatprep.subr.bf16.mxu1 %v2364_v1 }
  0x5d   : > { %2214 = vmatmul.mubr.msk.bf16.vlgmr.msra.gmra.mxu0 %vm422_vm1, %v2450_v28  ;;  %2220 = vmatmul.mubr.msk.bf16.vlgmr.msra.gmra.mxu1 %vm422_vm1, %v2452_v31  ;;  %v400_v28 = vunpack.c.l.bf16 %v398_v26 }
  0x5e   : > { %2224 = vmatpush3.bf16.msra.mxu0 %v2338_v0  ;;  %2230 = vmatpush3.bf16.msra.mxu1 %v2338_v0 }
  0x5f   : > { %2225 = vmatprep.mubr.msk.bf16.mxu0 %vm2365_vm0, %v2364_v1  ;;  %2231 = vmatprep.mubr.msk.bf16.mxu1 %vm2365_vm0, %v2364_v1  ;;  %v402_v30 = vmax.f32 %v400_v28, 0.0 }
  0x60   : > { %2235 = vmatprep.subr.bf16.mxu0 %v2364_v1  ;;  %2241 = vmatprep.subr.bf16.mxu1 %v2364_v1 }
  0x61   : > { %v403_v31 = vpack.c.bf16 %v402_v30, %v401_v29 }
  0x63   : > { %v1789_v33 = vshll.u32 %v403_v31, 16  ;;  %v1787_v34 = vshrl.u32 %v403_v31, 16 }
  0x65   : > { %2226 = vmatmul.mubr.msk.bf16.vlgmr.msra.gmra.mxu0 %vm422_vm1, %v2454_v32  ;;  %2232 = vmatmul.mubr.msk.bf16.vlgmr.msra.gmra.mxu1 %vm422_vm1, %v2469_v56  ;;  %v2339_v32 = vld [vmem:[%s2765_s2 + $0x18] sm:$0xff]   ;;  %v1791_v35 = vrot.slane %v1789_v33, 1 }
  0x66   : > { %2236 = vmatpush3.bf16.msra.mxu0 %v2338_v0  ;;  %2242 = vmatpush3.bf16.msra.mxu1 %v2338_v0 }
  0x67   : > { %2237 = vmatprep.mubr.msk.bf16.mxu0 %vm2365_vm0, %v2364_v1  ;;  %2243 = vmatprep.mubr.msk.bf16.mxu1 %vm2365_vm0, %v2364_v1  ;;  %v1792_v36 = vor.u32 %v1791_v35, %v1787_v34 }
  0x68   : > { %2247 = vmatprep.subr.bf16.mxu0 %v2364_v1  ;;  %2253 = vmatprep.subr.bf16.mxu1 %v2364_v1 }
  0x6d   : > { %2238 = vmatmul.mubr.msk.bf16.vlgmr.msra.gmra.mxu0 %vm422_vm1, %v2474_v58  ;;  %2244 = vmatmul.mubr.msk.bf16.vlgmr.msra.gmra.mxu1 %vm422_vm1, %v2496_v12 }
  0x6e   : > { %2248 = vmatpush3.bf16.msra.mxu0 %v2338_v0  ;;  %2254 = vmatpush3.bf16.msra.mxu1 %v2338_v0 }
  0x6f   : > { %2249 = vmatprep.mubr.msk.bf16.mxu0 %vm2365_vm0, %v2364_v1  ;;  %2255 = vmatprep.mubr.msk.bf16.mxu1 %vm2365_vm0, %v2364_v1 }
  0x70   : > { %2259 = vmatprep.subr.bf16.mxu0 %v2364_v1  ;;  %2265 = vmatprep.subr.bf16.mxu1 %v2364_v1 }
  0x75   : > { %2250 = vmatmul.mubr.msk.bf16.vlgmr.msra.gmra.mxu0 %vm422_vm1, %v2498_v13  ;;  %2256 = vmatmul.mubr.msk.bf16.vlgmr.msra.gmra.mxu1 %vm422_vm1, %v403_v31 }
  0x76   : > { %2260 = vmatpush3.bf16.msra.mxu0 %v2339_v32  ;;  %2266 = vmatpush3.bf16.msra.mxu1 %v2339_v32 }
  0x77   : > { %2261 = vmatprep.mubr.msk.bf16.mxu0 %vm2365_vm0, %v2364_v1  ;;  %2267 = vmatprep.mubr.msk.bf16.mxu1 %vm2365_vm0, %v2364_v1 }
  0x78   : > { %2271 = vmatprep.subr.bf16.mxu0 %v2364_v1  ;;  %2277 = vmatprep.subr.bf16.mxu1 %v2364_v1 }
  0x7d   : > { %2262 = vmatmul.mubr.msk.bf16.vlgmr.msra.gmra.mxu0 %vm422_vm1, %v2464_v50  ;;  %2268 = vmatmul.mubr.msk.bf16.vlgmr.msra.gmra.mxu1 %vm422_vm1, %v2484_v62 }
  0x7e   : > { %2272 = vmatpush3.bf16.msra.mxu0 %v2339_v32  ;;  %2278 = vmatpush3.bf16.msra.mxu1 %v2339_v32 }
  0x7f   : > { %2273 = vmatprep.mubr.msk.bf16.mxu0 %vm2365_vm0, %v2364_v1  ;;  %2279 = vmatprep.mubr.msk.bf16.mxu1 %vm2365_vm0, %v2364_v1 }
  0x80   : > { %2283 = vmatprep.subr.bf16.mxu0 %v2364_v1  ;;  %2289 = vmatprep.subr.bf16.mxu1 %v2364_v1 }
  0x85   : > { %2274 = vmatmul.mubr.msk.bf16.vlgmr.msra.gmra.mxu0 %vm422_vm1, %v2486_v63  ;;  %2280 = vmatmul.mubr.msk.bf16.vlgmr.msra.gmra.mxu1 %vm422_vm1, %v2508_v14 }
  0x86   : > { %2284 = vmatpush3.bf16.msra.mxu0 %v2339_v32  ;;  %2290 = vmatpush3.bf16.msra.mxu1 %v2339_v32 }
  0x87   : > { %2285 = vmatprep.mubr.msk.bf16.mxu0 %vm2365_vm0, %v2364_v1  ;;  %2291 = vmatprep.mubr.msk.bf16.mxu1 %vm2365_vm0, %v2364_v1 }
  0x88   : > { %2295 = vmatprep.subr.bf16.mxu0 %v2364_v1  ;;  %2301 = vmatprep.subr.bf16.mxu1 %v2364_v1 }
  0x8d   : > { %2286 = vmatmul.mubr.msk.bf16.vlgmr.msra.gmra.mxu0 %vm422_vm1, %v2510_v15  ;;  %2292 = vmatmul.mubr.msk.bf16.vlgmr.msra.gmra.mxu1 %vm422_vm1, %v2528_v22 }
  0x8e   : > { %2296 = vmatpush3.bf16.msra.mxu0 %v2339_v32  ;;  %2302 = vmatpush3.bf16.msra.mxu1 %v2339_v32 }
  0x8f   : > { %2297 = vmatprep.mubr.msk.bf16.mxu0 %vm2365_vm0, %v2364_v1  ;;  %2303 = vmatprep.mubr.msk.bf16.mxu1 %vm2365_vm0, %v2364_v1 }
  0x95   : > { %2298 = vmatmul.mubr.msk.bf16.vlgmr.msra.gmra.mxu0 %vm422_vm1, %v2530_v23  ;;  %2304 = vmatmul.mubr.msk.bf16.vlgmr.msra.gmra.mxu1 %vm422_vm1, %v1792_v36 }
  0xdd   : > { %v2666_v37 = vpop.f32.mrf.mxu0  ;;  %v2668_v38 = vpop.f32.mrf.mxu1 }
  0xdf   : > { %v2119_v39 = vpop.f32.mrf.mxu0  ;;  %v2125_v40 = vpop.f32.mrf.mxu1 }
  0xe1   : > { %v463_v41 = vpop.f32.mrf.mxu0  ;;  %v513_v42 = vpop.f32.mrf.mxu1 }
  0xe3   : > { %v2120_v43 = vpop.f32.mrf.mxu0  ;;  %v2126_v44 = vpop.f32.mrf.mxu1 }
  0xe5   : > { %v2670_v45 = vpop.f32.mrf.mxu0  ;;  %v2672_v46 = vpop.f32.mrf.mxu1 }
  0xe7   : > { %v2131_v1 = vpop.f32.mrf.mxu0  ;;  %v2137_v47 = vpop.f32.mrf.mxu1 }
  0xe9   : > { %v563_v48 = vpop.f32.mrf.mxu0  ;;  %v613_v49 = vpop.f32.mrf.mxu1 }
  0xeb   : > { %v2132_v50 = vpop.f32.mrf.mxu0  ;;  %v2138_v51 = vpop.f32.mrf.mxu1 }
  0xed   : > { %v2674_v52 = vpop.f32.mrf.mxu0  ;;  %v2676_v53 = vpop.f32.mrf.mxu1 }
  0xef   : > { %v2143_v54 = vpop.f32.mrf.mxu0  ;;  %v2149_v55 = vpop.f32.mrf.mxu1 }
  0xf1   : > { %v663_v56 = vpop.f32.mrf.mxu0  ;;  %v713_v57 = vpop.f32.mrf.mxu1 }
  0xf3   : > { %v2144_v58 = vpop.f32.mrf.mxu0  ;;  %v2150_v59 = vpop.f32.mrf.mxu1 }
  0xf5   : > { %v2678_v60 = vpop.f32.mrf.mxu0  ;;  %v2680_v61 = vpop.f32.mrf.mxu1 }
  0xf7   : > { %v2155_v62 = vpop.f32.mrf.mxu0  ;;  %v2161_v63 = vpop.f32.mrf.mxu1 }
  0xf9   : > { %v763_v2 = vpop.f32.mrf.mxu0  ;;  %v813_v3 = vpop.f32.mrf.mxu1 }
  0xfb   : > { %v2156_v4 = vpop.f32.mrf.mxu0  ;;  %v2162_v5 = vpop.f32.mrf.mxu1 }
  0xfd   : > { %v858_v6 = vpop.f32.mrf.mxu0  ;;  %v900_v7 = vpop.f32.mrf.mxu1 }
  0xff   : > { %v2167_v8 = vpop.f32.mrf.mxu0  ;;  %v2173_v9 = vpop.f32.mrf.mxu1 }
 0x101   : > { %v861_v10 = vpop.f32.mrf.mxu0  ;;  %v903_v11 = vpop.f32.mrf.mxu1 }
 0x103   : > { %v2168_v12 = vpop.f32.mrf.mxu0  ;;  %v2174_v13 = vpop.f32.mrf.mxu1 }
 0x105   : > { %v2682_v14 = vpop.f32.mrf.mxu0  ;;  %v2684_v15 = vpop.f32.mrf.mxu1 }
 0x107   : > { %v2179_v16 = vpop.f32.mrf.mxu0  ;;  %v2185_v17 = vpop.f32.mrf.mxu1 }
 0x108   : > { %v859_v16 = vadd.f32 %v858_v6, %v2666_v37  ;;  %v901_v17 = vadd.f32 %v900_v7, %v2668_v38  ;;  %v2709_v37 = vld [vmem:[%s2767_s4] ss:$0 sm:$0xff] }
 0x109   : > { %v945_v18 = vpop.f32.mrf.mxu0  ;;  %v987_v19 = vpop.f32.mrf.mxu1 }
 0x10b   : > { %v2180_v20 = vpop.f32.mrf.mxu0  ;;  %v2186_v21 = vpop.f32.mrf.mxu1 }
 0x10d   : > { %v2686_v22 = vpop.f32.mrf.mxu0  ;;  %v2688_v23 = vpop.f32.mrf.mxu1 }
 0x10f   : > { %v2191_v24 = vpop.f32.mrf.mxu0  ;;  %v2197_v0 = vpop.f32.mrf.mxu1 }
 0x110   : > { %v2703_v0 = vld [vmem:[%s2766_s3] ss:$0 sm:$0xff] }
 0x111   : > { %v1029_v25 = vpop.f32.mrf.mxu0  ;;  %v1071_v26 = vpop.f32.mrf.mxu1 }
 0x113   : > { %v2192_v27 = vpop.f32.mrf.mxu0  ;;  %v2198_v28 = vpop.f32.mrf.mxu1 }
 0x115   : > { %v2690_v29 = vpop.f32.mrf.mxu0  ;;  %v2692_v30 = vpop.f32.mrf.mxu1 }
 0x117   : > { %v2203_v31 = vpop.f32.mrf.mxu0  ;;  %v2209_v32 = vpop.f32.mrf.mxu1 }
 0x119   : > { %v1113_v33 = vpop.f32.mrf.mxu0  ;;  %v1155_v34 = vpop.f32.mrf.mxu1 }
 0x11a   : > { %v943_v33 = vadd.f32 %v2682_v14, %v2670_v45  ;;  %v985_v34 = vadd.f32 %v2684_v15, %v2672_v46 }
 0x11b   : > { %v2204_v35 = vpop.f32.mrf.mxu0  ;;  %v2210_v36 = vpop.f32.mrf.mxu1 }
 0x11d   : > { %v1201_v39 = vpop.f32.mrf.mxu0  ;;  %v1241_v40 = vpop.f32.mrf.mxu1 }
 0x11e   : > { %v1490_v20 = vadd.f32 %v1201_v39, %v859_v16  ;;  %v1491_v21 = vadd.f32 %v1241_v40, %v901_v17 }
 0x11f   : > { %v2215_v41 = vpop.f32.mrf.mxu0  ;;  %v2221_v42 = vpop.f32.mrf.mxu1 }
 0x121   : > { %v1204_v43 = vpop.f32.mrf.mxu0  ;;  %v1244_v44 = vpop.f32.mrf.mxu1 }
 0x123   : > { %v2216_v1 = vpop.f32.mrf.mxu0  ;;  %v2222_v47 = vpop.f32.mrf.mxu1 }
 0x125   : > { %v1281_v48 = vpop.f32.mrf.mxu0  ;;  %v1321_v49 = vpop.f32.mrf.mxu1 }
 0x126   : > { %v1492_v41 = vadd.f32 %v1281_v48, %v943_v33  ;;  %v1493_v42 = vadd.f32 %v1321_v49, %v985_v34  ;;  %v1027_v48 = vadd.f32 %v2686_v22, %v2674_v52  ;;  %v1069_v49 = vadd.f32 %v2688_v23, %v2676_v53 }
 0x127   : > { %v2227_v50 = vpop.f32.mrf.mxu0  ;;  %v2233_v51 = vpop.f32.mrf.mxu1 }
 0x129   : > { %v1284_v54 = vpop.f32.mrf.mxu0  ;;  %v1324_v55 = vpop.f32.mrf.mxu1 }
 0x12b   : > { %v2228_v56 = vpop.f32.mrf.mxu0  ;;  %v2234_v57 = vpop.f32.mrf.mxu1 }
 0x12d   : > { %v1361_v58 = vpop.f32.mrf.mxu0  ;;  %v1401_v59 = vpop.f32.mrf.mxu1 }
 0x12f   : > { %v2239_v62 = vpop.f32.mrf.mxu0  ;;  %v2245_v63 = vpop.f32.mrf.mxu1 }
 0x130   : > { %v1494_v62 = vadd.f32 %v1361_v58, %v1027_v48  ;;  %v1495_v63 = vadd.f32 %v1401_v59, %v1069_v49  ;;  %v1111_v58 = vadd.f32 %v2690_v29, %v2678_v60  ;;  %v1153_v59 = vadd.f32 %v2692_v30, %v2680_v61 }
 0x131   : > { %v1364_v2 = vpop.f32.mrf.mxu0  ;;  %v1404_v3 = vpop.f32.mrf.mxu1 }
 0x133   : > { %v2240_v4 = vpop.f32.mrf.mxu0  ;;  %v2246_v5 = vpop.f32.mrf.mxu1 }
 0x135   : > { %v2694_v8 = vpop.f32.mrf.mxu0  ;;  %v2696_v9 = vpop.f32.mrf.mxu1 }
 0x137   : > { %v2251_v10 = vpop.f32.mrf.mxu0  ;;  %v2257_v11 = vpop.f32.mrf.mxu1 }
 0x139   : > { %v1444_v12 = vpop.f32.mrf.mxu0  ;;  %v1487_v13 = vpop.f32.mrf.mxu1 }
 0x13b   : > { %v2252_v18 = vpop.f32.mrf.mxu0  ;;  %v2258_v19 = vpop.f32.mrf.mxu1 }
 0x13c   : > { %v1496_v18 = vadd.f32 %v2694_v8, %v1111_v58  ;;  %v1497_v19 = vadd.f32 %v2696_v9, %v1153_v59 }
 0x13d   : > { %v1541_v24 = vpop.f32.mrf.mxu0  ;;  %v1581_v25 = vpop.f32.mrf.mxu1 }
 0x13e   : > { %v1836_v26 = vadd.f32 %v1541_v24, %v1490_v20  ;;  %v1837_v27 = vadd.f32 %v1581_v25, %v1491_v21 }
 0x13f   : > { %v2263_v38 = vpop.f32.mrf.mxu0  ;;  %v2269_v6 = vpop.f32.mrf.mxu1 }
 0x140   : > { %v1851_v7 = vmul.f32 %v2703_v0, %v1836_v26  ;;  %v1852_v28 = vmul.f32 %v2703_v0, %v1837_v27 }
 0x141   : > { %v1544_v31 = vpop.f32.mrf.mxu0  ;;  %v1584_v32 = vpop.f32.mrf.mxu1 }
 0x142   : > { %v1866_v35 = vadd.f32 %v2709_v37, %v1851_v7  ;;  %v1867_v36 = vadd.f32 %v2709_v37, %v1852_v28 }
 0x143   : > { %v2264_v39 = vpop.f32.mrf.mxu0  ;;  %v2270_v40 = vpop.f32.mrf.mxu1 }
 0x144   : > { %1874 = vst [vmem:[%s2716_s24] sm:$0xff] %v1866_v35  ;;  %1875 = vst [vmem:[%s2716_s24 + $0x8] sm:$0xff] %v1867_v36 }
 0x145   : > { %v1621_v43 = vpop.f32.mrf.mxu0  ;;  %v1661_v44 = vpop.f32.mrf.mxu1 }
 0x146   : > { %v1838_v1 = vadd.f32 %v1621_v43, %v1492_v41  ;;  %v1839_v47 = vadd.f32 %v1661_v44, %v1493_v42 }
 0x147   : > { %v2275_v45 = vpop.f32.mrf.mxu0  ;;  %v2281_v14 = vpop.f32.mrf.mxu1 }
 0x148   : > { %v1853_v46 = vmul.f32 %v2703_v0, %v1838_v1  ;;  %v1854_v15 = vmul.f32 %v2703_v0, %v1839_v47 }
 0x149   : > { %v1624_v50 = vpop.f32.mrf.mxu0  ;;  %v1664_v51 = vpop.f32.mrf.mxu1 }
 0x14a   : > { %v1868_v54 = vadd.f32 %v2709_v37, %v1853_v46  ;;  %v1869_v55 = vadd.f32 %v2709_v37, %v1854_v15 }
 0x14b   : > { %v2276_v56 = vpop.f32.mrf.mxu0  ;;  %v2282_v57 = vpop.f32.mrf.mxu1 }
 0x14c   : > { %1876 = vst [vmem:[%s2716_s24 + $0x10] sm:$0xff] %v1868_v54  ;;  %1877 = vst [vmem:[%s2716_s24 + $0x18] sm:$0xff] %v1869_v55 }
 0x14d   : > { %v1701_v2 = vpop.f32.mrf.mxu0  ;;  %v1741_v3 = vpop.f32.mrf.mxu1 }
 0x14e   : > { %v1840_v4 = vadd.f32 %v1701_v2, %v1494_v62  ;;  %v1841_v5 = vadd.f32 %v1741_v3, %v1495_v63 }
 0x14f   : > { %v2287_v52 = vpop.f32.mrf.mxu0  ;;  %v2293_v22 = vpop.f32.mrf.mxu1 }
 0x150   : > { %v1855_v53 = vmul.f32 %v2703_v0, %v1840_v4  ;;  %v1856_v23 = vmul.f32 %v2703_v0, %v1841_v5 }
 0x151   : > { %v1704_v10 = vpop.f32.mrf.mxu0  ;;  %v1744_v11 = vpop.f32.mrf.mxu1 }
 0x152   : > { %v1870_v12 = vadd.f32 %v2709_v37, %v1855_v53  ;;  %v1871_v13 = vadd.f32 %v2709_v37, %v1856_v23 }
 0x153   : > { %v2288_v16 = vpop.f32.mrf.mxu0  ;;  %v2294_v17 = vpop.f32.mrf.mxu1 }
 0x154   : > { %1878 = vst [vmem:[%s2716_s24 + $0x20] sm:$0xff] %v1870_v12  ;;  %1879 = vst [vmem:[%s2716_s24 + $0x28] sm:$0xff] %v1871_v13 }
 0x155   : > { %v1781_v20 = vpop.f32.mrf.mxu0  ;;  %v1830_v21 = vpop.f32.mrf.mxu1 }
 0x156   : > { %v1842_v60 = vadd.f32 %v1781_v20, %v1496_v18  ;;  %v1843_v29 = vadd.f32 %v1830_v21, %v1497_v19 }
 0x157   : > { %v2299_v24 = vpop.f32.mrf.mxu0  ;;  %v2305_v61 = vpop.f32.mrf.mxu1 }
 0x158   : > { %v1857_v30 = vmul.f32 %v2703_v0, %v1842_v60  ;;  %v1858_v25 = vmul.f32 %v2703_v0, %v1843_v29 }
 0x159   : > { %v1784_v26 = vpop.f32.mrf.mxu0  ;;  %v1833_v27 = vpop.f32.mrf.mxu1 }
 0x15a   : > { %v1872_v8 = vadd.f32 %v2709_v37, %v1857_v30  ;;  %v1873_v9 = vadd.f32 %v2709_v37, %v1858_v25 }
 0x15b   : > { %v2300_v38 = vpop.f32.mrf.mxu0  ;;  %v2306_v6 = vpop.f32.mrf.mxu1 }
 0x15c   : > { %1880 = vst [vmem:[%s2716_s24 + $0x30] sm:$0xff] %v1872_v8  ;;  %1881 = vst [vmem:[%s2716_s24 + $0x38] sm:$0xff] %v1873_v9 }
 0x15d PF: > { %s15_s20 = sadd.s32 1, %s2362_s20   ;;  %s2769_s18 = smov %s2358_s19 }
 0x15e   : > { %p12_p5 = scmp.ge.s32.totalorder %s15_s20, 4   ;;  %s2770_s19 = smov %s2772_s21 }
 0x160   :  { %14 = sbr.rel (!%p12_p5) target bundleno = 2 (0x2), region = 76 }

</bundles_post_ra>
